<compile_context>
chip_gen: v6e
topology: v6e:2x2x1
jax: 0.10.0
libtpu: 0.0.40
codegen_flags: <defaults>
</compile_context>

<pallas_src>
import math

import jax
import jax.numpy as jnp
from jax.experimental import pallas as pl
from jax.experimental.pallas import tpu as pltpu


def _round_up(x, m):
    return ((x + m - 1) // m) * m


# ----------------------------------------------------------------------------
# Pass 1 kernel:  h1 = relu(A @ (X @ W1) + b1)
# ----------------------------------------------------------------------------
def gcn_layer1_kernel(a_ref, x_ref, w1_ref, b1_ref, h1_ref, acc_ref):
    k = pl.program_id(1)

    @pl.when(k == 0)
    def _():
        acc_ref[...] = jnp.zeros_like(acc_ref)

    # Feature transform for this column block (cheap: Cin << TM); bf16 MXU, f32 acc.
    xw = jnp.dot(x_ref[...], w1_ref[...], preferred_element_type=jnp.float32)
    acc_ref[...] += jnp.dot(a_ref[...], xw.astype(jnp.bfloat16),
                            preferred_element_type=jnp.float32)

    @pl.when(k == pl.num_programs(1) - 1)
    def _():
        # TODO(synk): dropout between layers is identity in eval mode; omitted.
        h1 = jnp.maximum(acc_ref[...] + b1_ref[...], 0.0)
        h1_ref[...] = h1.astype(h1_ref.dtype)


# ----------------------------------------------------------------------------
# Pass 2 kernel:  logits = (A @ (h1 @ W2) + b2) @ Wc + bc
# ----------------------------------------------------------------------------
def gcn_layer2_head_kernel(a_ref, h1_ref, w2_ref, b2_ref, wc_ref, bc_ref,
                           out_ref, acc_ref):
    k = pl.program_id(1)

    @pl.when(k == 0)
    def _():
        acc_ref[...] = jnp.zeros_like(acc_ref)

    hw = jnp.dot(h1_ref[...], w2_ref[...], preferred_element_type=jnp.float32)
    acc_ref[...] += jnp.dot(a_ref[...], hw.astype(jnp.bfloat16),
                            preferred_element_type=jnp.float32)

    @pl.when(k == pl.num_programs(1) - 1)
    def _():
        emb = acc_ref[...] + b2_ref[...]
        logits = jnp.dot(emb.astype(jnp.bfloat16), wc_ref[...],
                         preferred_element_type=jnp.float32) + bc_ref[...]
        out_ref[...] = logits.astype(out_ref.dtype)


# ----------------------------------------------------------------------------
# Wrapper: padding, dtype casts, the two pallas_calls
# ----------------------------------------------------------------------------
def node_classifier_forward(a_norm, x, w1, b1, w2, b2, wc, bc, *, tm=256, tk=512):
    n, cin = x.shape
    hid = w1.shape[1]
    cout = w2.shape[1]
    nc = wc.shape[1]

    # Pad node count so both the TM (row) and TK (reduction) tilings divide evenly.
    # Zero-padded A columns contribute nothing to valid rows; padded output rows
    # are sliced off.
    lcm = tm * tk // math.gcd(tm, tk)
    n_pad = _round_up(n, lcm)
    nc_pad = _round_up(nc, 128)        # lane-dense logits store; sliced afterwards

    bf16 = jnp.bfloat16
    a_p = jnp.zeros((n_pad, n_pad), bf16).at[:n, :n].set(a_norm.astype(bf16))
    x_p = jnp.zeros((n_pad, cin), bf16).at[:n, :].set(x.astype(bf16))
    w1_b = w1.astype(bf16)
    w2_b = w2.astype(bf16)
    wc_p = jnp.zeros((cout, nc_pad), bf16).at[:, :nc].set(wc.astype(bf16))
    b1_f = b1.astype(jnp.float32).reshape(1, hid)
    b2_f = b2.astype(jnp.float32).reshape(1, cout)
    bc_p = jnp.zeros((1, nc_pad), jnp.float32).at[:, :nc].set(
        bc.astype(jnp.float32).reshape(1, nc))

    grid = (n_pad // tm, n_pad // tk)
    cparams = pltpu.CompilerParams(
        dimension_semantics=("parallel", "arbitrary"),   # row blocks shard across TCs
        vmem_limit_bytes=64 * 1024 * 1024)

    # ---------------- pass 1: GCN layer 1 ----------------
    h1 = pl.pallas_call(
        gcn_layer1_kernel,
        out_shape=jax.ShapeDtypeStruct((n_pad, hid), bf16),
        grid_spec=pltpu.PrefetchScalarGridSpec(
            num_scalar_prefetch=0,
            grid=grid,
            in_specs=[
                pl.BlockSpec((tm, tk), lambda i, k: (i, k)),      # A (streamed)
                pl.BlockSpec((tk, cin), lambda i, k: (k, 0)),     # X
                pl.BlockSpec((cin, hid), lambda i, k: (0, 0)),    # W1 (resident)
                pl.BlockSpec((1, hid), lambda i, k: (0, 0)),      # b1
            ],
            out_specs=pl.BlockSpec((tm, hid), lambda i, k: (i, 0)),
            scratch_shapes=[pltpu.VMEM((tm, hid), jnp.float32)],
        ),
        compiler_params=cparams,
        cost_estimate=pl.CostEstimate(
            flops=2 * n_pad * n_pad * hid
                  + 2 * (n_pad // tm) * n_pad * cin * hid,
            transcendentals=0,
            bytes_accessed=2 * n_pad * n_pad + 2 * n_pad * (cin + hid)),
    )(a_p, x_p, w1_b, b1_f)

    # ---------------- pass 2: GCN layer 2 + classifier head ----------------
    logits_pad = pl.pallas_call(
        gcn_layer2_head_kernel,
        out_shape=jax.ShapeDtypeStruct((n_pad, nc_pad), jnp.float32),
        grid_spec=pltpu.PrefetchScalarGridSpec(
            num_scalar_prefetch=0,
            grid=grid,
            in_specs=[
                pl.BlockSpec((tm, tk), lambda i, k: (i, k)),       # A (streamed)
                pl.BlockSpec((tk, hid), lambda i, k: (k, 0)),      # h1
                pl.BlockSpec((hid, cout), lambda i, k: (0, 0)),    # W2
                pl.BlockSpec((1, cout), lambda i, k: (0, 0)),      # b2
                pl.BlockSpec((cout, nc_pad), lambda i, k: (0, 0)), # Wc (padded)
                pl.BlockSpec((1, nc_pad), lambda i, k: (0, 0)),    # bc (padded)
            ],
            out_specs=pl.BlockSpec((tm, nc_pad), lambda i, k: (i, 0)),
            scratch_shapes=[pltpu.VMEM((tm, cout), jnp.float32)],
        ),
        compiler_params=cparams,
        cost_estimate=pl.CostEstimate(
            flops=2 * n_pad * n_pad * cout
                  + 2 * (n_pad // tm) * n_pad * hid * cout
                  + 2 * n_pad * cout * nc_pad,
            transcendentals=0,
            bytes_accessed=2 * n_pad * n_pad + 2 * n_pad * hid
                           + 4 * n_pad * nc_pad),
    )(a_p, h1, w2_b, b2_f, wc_p, bc_p)

    return logits_pad[:n, :nc]


# ----------------------------------------------------------------------------
# Plain-JAX glue: build GCN-normalized dense adjacency from edge_index (COO)
# ----------------------------------------------------------------------------
def build_gcn_adjacency(edge_index, num_nodes, edge_weight=None):
    src, dst = edge_index[0], edge_index[1]
    if edge_weight is None:
        edge_weight = jnp.ones(src.shape[0], dtype=jnp.float32)
    loop = jnp.arange(num_nodes, dtype=src.dtype)               # self-loops
    src = jnp.concatenate([src, loop])
    dst = jnp.concatenate([dst, loop])
    w = jnp.concatenate([edge_weight, jnp.ones(num_nodes, dtype=jnp.float32)])
    deg = jnp.zeros(num_nodes, dtype=jnp.float32).at[dst].add(w)
    dinv = jnp.where(deg > 0, 1.0 / jnp.sqrt(deg), 0.0)
    norm = dinv[src] * w * dinv[dst]
    a = jnp.zeros((num_nodes, num_nodes), dtype=jnp.float32)
    a = a.at[dst, src].add(norm)      # out[i] = sum_{(j->i)} norm_ji * h[j]
    return a


# ----------------------------------------------------------------------------
# Reference (pure f32 JAX) for sanity check
# ----------------------------------------------------------------------------
def reference_forward(a, x, w1, b1, w2, b2, wc, bc):
    h1 = jnp.maximum(a @ (x @ w1) + b1, 0.0)
    h2 = a @ (h1 @ w2) + b2
    return h2 @ wc + bc


if __name__ == "__main__":
    key = jax.random.PRNGKey(0)
    num_nodes, in_channels, hidden_channels = 1024, 64, 128
    out_channels, num_classes = 128, 16
    num_edges = 4096

    ks = jax.random.split(key, 10)
    x = jax.random.normal(ks[0], (num_nodes, in_channels), dtype=jnp.float32)
    src = jax.random.randint(ks[1], (num_edges,), 0, num_nodes, dtype=jnp.int32)
    dst = jax.random.randint(ks[2], (num_edges,), 0, num_nodes, dtype=jnp.int32)
    edge_index = jnp.stack([src, dst], axis=0)                  # [2, num_edges]

    # GCNConv lin weights [out,in] -> stored transposed; Linear head likewise.
    w1 = jax.random.normal(ks[3], (in_channels, hidden_channels), jnp.float32) * 0.1
    b1 = jax.random.normal(ks[4], (1, hidden_channels), jnp.float32) * 0.1
    w2 = jax.random.normal(ks[5], (hidden_channels, out_channels), jnp.float32) * 0.1
    b2 = jax.random.normal(ks[6], (1, out_channels), jnp.float32) * 0.1
    wc = jax.random.normal(ks[7], (out_channels, num_classes), jnp.float32) * 0.1
    bc = jax.random.normal(ks[8], (1, num_classes), jnp.float32) * 0.1

    a_norm = build_gcn_adjacency(edge_index, num_nodes)

    logits = node_classifier_forward(a_norm, x, w1, b1, w2, b2, wc, bc)
    logits = jax.block_until_ready(logits)

    ref = reference_forward(a_norm, x, w1, b1, w2, b2, wc, bc)
    assert logits.shape == (num_nodes, num_classes)
    # bf16 MXU inputs with f32 accumulation -> relaxed tolerance vs pure-f32 reference.
    assert jnp.allclose(logits, ref, atol=5e-2, rtol=5e-2)

    print("KERNEL_OK")
</pallas_src>

<mosaic_0001>
module attributes {stable_mosaic.version = 11 : i64} {
  func.func @gcn_layer1_kernel(%arg0: i32, %arg1: i32, %arg2: memref<256x512xbf16, #tpu.memory_space<vmem>>, %arg3: memref<512x64xbf16, #tpu.memory_space<vmem>>, %arg4: memref<64x128xbf16, #tpu.memory_space<vmem>>, %arg5: memref<1x128xf32, #tpu.memory_space<vmem>>, %arg6: memref<256x128xbf16, #tpu.memory_space<vmem>>, %arg7: memref<256x128xf32, #tpu.memory_space<vmem>>) attributes {dimension_semantics = [#tpu.dimension_semantics<parallel>, #tpu.dimension_semantics<arbitrary>], iteration_bounds = array<i64: 4, 2>, scalar_prefetch = 0 : i64, scratch_operands = 1 : i64, tpu.core_type = #tpu.core_type<tc>, window_params = [{transform_indices = @transform_0, window_bounds = array<i64: 256, 512>}, {transform_indices = @transform_1, window_bounds = array<i64: 512, 64>}, {pipeline_mode = #tpu.pipeline_mode<synchronous>, transform_indices = @transform_2, window_bounds = array<i64: 64, 128>}, {pipeline_mode = #tpu.pipeline_mode<synchronous>, transform_indices = @transform_3, window_bounds = array<i64: 1, 128>}, {transform_indices = @transform_4, window_bounds = array<i64: 256, 128>}]} {
    %c0_i32 = arith.constant 0 : i32
    %0 = arith.cmpi eq, %arg1, %c0_i32 : i32
    %1 = arith.extui %0 : i1 to i32
    %c0_i32_0 = arith.constant 0 : i32
    %2 = arith.cmpi ne, %1, %c0_i32_0 : i32
    scf.if %2 {
      %cst_12 = arith.constant 0.000000e+00 : f32
      %15 = vector.broadcast %cst_12 : f32 to vector<256x128xf32>
      %c0_13 = arith.constant 0 : index
      %c0_14 = arith.constant 0 : index
      %16 = vector.load %arg7[%c0_13, %c0_14] : memref<256x128xf32, #tpu.memory_space<vmem>>, vector<256x128xf32>
      tpu.vector_store %arg7[%c0_13, %c0_14], %15 {strides = array<i32>} : memref<256x128xf32, #tpu.memory_space<vmem>>, vector<256x128xf32>,
    } else {
    }
    %c0 = arith.constant 0 : index
    %c0_1 = arith.constant 0 : index
    %3 = vector.load %arg3[%c0, %c0_1] : memref<512x64xbf16, #tpu.memory_space<vmem>>, vector<512x64xbf16>
    %c0_2 = arith.constant 0 : index
    %c0_3 = arith.constant 0 : index
    %4 = vector.load %arg4[%c0_2, %c0_3] : memref<64x128xbf16, #tpu.memory_space<vmem>>, vector<64x128xbf16>
    %cst = arith.constant dense<0.000000e+00> : vector<512x128xf32>
    %5 = tpu.matmul %3, %4, %cst {dimension_numbers = #tpu.dot_dimension_numbers<[1], [0], [0], [1], [0, 0, 1, 1], [], []>} : vector<512x64xbf16>, vector<64x128xbf16>, vector<512x128xf32> -> vector<512x128xf32>
    %c0_4 = arith.constant 0 : index
    %c0_5 = arith.constant 0 : index
    %6 = vector.load %arg7[%c0_4, %c0_5] : memref<256x128xf32, #tpu.memory_space<vmem>>, vector<256x128xf32>
    %c0_6 = arith.constant 0 : index
    %c0_7 = arith.constant 0 : index
    %7 = vector.load %arg2[%c0_6, %c0_7] : memref<256x512xbf16, #tpu.memory_space<vmem>>, vector<256x512xbf16>
    %8 = arith.truncf %5 : vector<512x128xf32> to vector<512x128xbf16>
    %cst_8 = arith.constant dense<0.000000e+00> : vector<256x128xf32>
    %9 = tpu.matmul %7, %8, %cst_8 {dimension_numbers = #tpu.dot_dimension_numbers<[1], [0], [0], [1], [0, 0, 1, 1], [], []>} : vector<256x512xbf16>, vector<512x128xbf16>, vector<256x128xf32> -> vector<256x128xf32>
    %10 = arith.addf %6, %9 : vector<256x128xf32>
    %c0_9 = arith.constant 0 : index
    %c0_10 = arith.constant 0 : index
    %11 = vector.load %arg7[%c0_9, %c0_10] : memref<256x128xf32, #tpu.memory_space<vmem>>, vector<256x128xf32>
    tpu.vector_store %arg7[%c0_9, %c0_10], %10 {strides = array<i32>} : memref<256x128xf32, #tpu.memory_space<vmem>>, vector<256x128xf32>,
    %c1_i32 = arith.constant 1 : i32
    %12 = arith.cmpi eq, %arg1, %c1_i32 : i32
    %13 = arith.extui %12 : i1 to i32
    %c0_i32_11 = arith.constant 0 : i32
    %14 = arith.cmpi ne, %13, %c0_i32_11 : i32
    scf.if %14 {
      %c0_12 = arith.constant 0 : index
      %c0_13 = arith.constant 0 : index
      %15 = vector.load %arg7[%c0_12, %c0_13] : memref<256x128xf32, #tpu.memory_space<vmem>>, vector<256x128xf32>
      %c0_14 = arith.constant 0 : index
      %c0_15 = arith.constant 0 : index
      %16 = vector.load %arg5[%c0_14, %c0_15] : memref<1x128xf32, #tpu.memory_space<vmem>>, vector<1x128xf32>
      %17 = vector.broadcast %16 : vector<1x128xf32> to vector<256x128xf32>
      %18 = arith.addf %15, %17 : vector<256x128xf32>
      %cst_16 = arith.constant 0.000000e+00 : f32
      %19 = vector.broadcast %cst_16 : f32 to vector<256x128xf32>
      %20 = arith.maximumf %18, %19 : vector<256x128xf32>
      %21 = arith.truncf %20 : vector<256x128xf32> to vector<256x128xbf16>
      %c0_17 = arith.constant 0 : index
      %c0_18 = arith.constant 0 : index
      %22 = vector.load %arg6[%c0_17, %c0_18] : memref<256x128xbf16, #tpu.memory_space<vmem>>, vector<256x128xbf16>
      tpu.vector_store %arg6[%c0_17, %c0_18], %21 {strides = array<i32>} : memref<256x128xbf16, #tpu.memory_space<vmem>>, vector<256x128xbf16>,
    } else {
    }
    return
  }
  func.func @transform_0(%arg0: i32, %arg1: i32) -> (i32, i32) {
    %c0_i32 = arith.constant 0 : i32
    return %arg0, %arg1 : i32, i32
  }
  func.func @transform_1(%arg0: i32, %arg1: i32) -> (i32, i32) {
    %c0_i32 = arith.constant 0 : i32
    %c0_i32_0 = arith.constant 0 : i32
    return %arg1, %c0_i32 : i32, i32
  }
  func.func @transform_2(%arg0: i32, %arg1: i32) -> (i32, i32) {
    %c0_i32 = arith.constant 0 : i32
    %c0_i32_0 = arith.constant 0 : i32
    %c0_i32_1 = arith.constant 0 : i32
    return %c0_i32, %c0_i32_0 : i32, i32
  }
  func.func @transform_3(%arg0: i32, %arg1: i32) -> (i32, i32) {
    %c0_i32 = arith.constant 0 : i32
    %c0_i32_0 = arith.constant 0 : i32
    %c0_i32_1 = arith.constant 0 : i32
    return %c0_i32, %c0_i32_0 : i32, i32
  }
  func.func @transform_4(%arg0: i32, %arg1: i32) -> (i32, i32) {
    %c0_i32 = arith.constant 0 : i32
    %c0_i32_0 = arith.constant 0 : i32
    return %arg0, %c0_i32 : i32, i32
  }
}

</mosaic_0001>

<bundles_post_ra>
// kernel: tpu_custom_call.1
= control target key start
LH: loop header
LB: loop body
LE: loop exit
PB: predicated region body
PF: predicated region fallthrough
CT: control target
= control target key end

     0   :  { %s3914_s0 = inlined_call_operand.hbm [shape: bf16[1024,1024], index: 0, kind: input, shape index: {}]   ;;  %s3915_s1 = inlined_call_operand.vmem [shape: bf16[1024,64], index: 1, kind: input, shape index: {}]   ;;  %s3916_s2 = inlined_call_operand.hbm [shape: bf16[64,128], index: 2, kind: input, shape index: {}]   ;;  %s3917_s3 = inlined_call_operand.hbm [shape: f32[1,128], index: 3, kind: input, shape index: {}]   ;;  %s3918_s4 = inlined_call_operand.hbm [shape: bf16[1024,128], index: 4, kind: output, shape index: {}]  }
   0x1   :  { %3939 = sst [smem:[#allocation30_spill]] %s3915_s1 }
   0x2   :  { %3940 = sst [smem:[#allocation31_spill]] %s3916_s2 }
   0x3   :  { %3941 = sst [smem:[#allocation32_spill]] %s3917_s3 }
   0x4   :  { %3942 = sst [smem:[#allocation33_spill]] %s3918_s4 }
   0x5   :  { %9 = vsyncpa [#allocation4], 0 }
   0x6   :  { %11 = vsyncpa [#allocation4 + $0x1], 0 }
   0x7   :  { %12 = vsyncpa [#allocation7], 0 }
   0x8   :  { %13 = vsyncpa [#allocation5], 0 }
   0x9   :  { %15 = vsyncpa [#allocation5 + $0x1], 0  ;;  %s3362_s15 = smov 0   ;;  %s3364_s16 = smov 0  }
   0xa   :  { %s3366_s17 = smov 0   ;;  %s3368_s18 = smov 0  }
   0xb   :  { %s3370_s19 = smov 0   ;;  %s3372_s20 = smov 0  }
   0xc   :  { %s3374_s21 = smov 0   ;;  %s3376_s22 = smov 0  }
   0xd   :  { %s3378_s23 = smov 0   ;;  %s3380_s24 = smov 0  }
   0xe   :  { %s3382_s25 = smov 0  }
   0xf LB: > { %3943 = sst [smem:[#allocation13_spill]] %s3283_s15  ;;  %s2197_s26 = sadd.s32 4294967295, %s3323_s25   ;;  %s3323_s25 = sphi %s3382_s25, %s21_s25   ;;  %s3319_s24 = sphi %s3380_s24, %s4010_s24   ;;  %s3315_s23 = sphi %s3378_s23, %s4009_s23   ;;  %s3311_s22 = sphi %s3376_s22, %s4008_s22   ;;  %s3307_s21 = sphi %s3374_s21, %s4000_s21   ;;  %s3303_s20 = sphi %s3372_s20, %s4007_s20   ;;  %s3299_s19 = sphi %s3370_s19, %s4006_s19   ;;  %s3295_s18 = sphi %s3368_s18, %s4005_s18   ;;  %s3291_s17 = sphi %s3366_s17, %s4004_s17   ;;  %s3287_s16 = sphi %s3364_s16, %s4003_s16   ;;  %s3283_s15 = sphi %s3362_s15, %s4002_s15  }
  0x10   : > { %3944 = sst [smem:[#allocation14_spill]] %s3311_s22  ;;  %s2198_s27 = sadd.s32 4294967294, %s3323_s25  }
  0x11   : > { %3945 = sst [smem:[#allocation15_spill]] %s3315_s23  ;;  %p49_p0 = scmp.ne.s32.totalorder %s3303_s20, %s3299_s19 }
  0x12   : > { %3946 = sst [smem:[#allocation16_spill]] %s3323_s25  ;;  %p50_p1 = scmp.eq.s32.totalorder %s3323_s25, 0 }
  0x13   : > { %p55_p2 = scmp.ne.s32.totalorder %s3299_s19, %s3295_s18  ;;  %p3422_p3 = scmp.eq.s32.totalorder %s2197_s26, 0 }
  0x14   : > { %p3427_p4 = por %p50_p1, %p49_p0  ;;  %p146_p5 = scmp.ne.s32.totalorder %s3291_s17, %s3287_s16 }
  0x15   : > { %s3947_s29 = scalar_select %p3422_p3, 1, 0 }
  0x16   : > { %p3435_p6 = por %p3422_p3, %p55_p2  ;;  %p147_p7 = scmp.eq.s32.totalorder %s2197_s26, 7 }
  0x17   : > { %p152_p8 = scmp.ne.s32.totalorder %s3287_s16, %s3283_s15  ;;  %p153_p9 = scmp.eq.s32.totalorder %s2198_s27, 7 }
  0x18   : > { %p3441_p10 = por %p147_p7, %p146_p5  ;;  %p2199_p11 = scmp.ge.s32.totalorder %s3323_s25, 1 }
  0x19   : > { %p3446_p12 = por %p153_p9, %p152_p8  ;;  %p160_p13 = scmp.lt.s32.totalorder %s3323_s25, 9 }
  0x1a   : > { %s3950_s7 = scalar_select %p3441_p10, 1, 0 }
  0x1b   : > { %s3952_s8 = scalar_select %p3446_p12, 1, 0 }
  0x1c   : > { %3951 = sst [smem:[#allocation17_spill]] %s3950_s7  ;;  %p3451_p0 = pnand %p2199_p11, %p160_p13 }
  0x1d   : > { %3953 = sst [smem:[#allocation18_spill]] %s3952_s8  ;;  %s3325_s10 = smov [#allocation6]  }
  0x1e   : > { %s172_s11 = sshll.u32 %s3325_s10, 4  ;;  %p2868_p1 = pneg %p3451_p0  ;;  %s173_s11 = int_to_ptr.vmem [resolvable:$true] %s172_s11 }
  0x1f   : > { %p2885_p2 = scmp.lt.s32.totalorder %s3323_s25, 8  ;;  %s3326_s14 = smov [#allocation8]  }
  0x20   : > { %p3460_p5 = pnand %p2868_p1, %p3422_p3  ;;  %s186_s18 = sshll.u32 %s3326_s14, 4  ;;  %s187_s18 = int_to_ptr.vmem [resolvable:$true] %s186_s18 }
  0x21   : > { %p3466_p7 = pnand %p2885_p2, %p3427_p4  ;;  %s3130_s26 = scalar_lea.vmem %s173_s11, 512 }
  0x22   : > { %p3121_p8 = pneg %p3460_p5  ;;  %p3131_p9 = scmp.ne.s32.totalorder %s173_s11, %s3130_s26 }
  0x23   : > { %p3138_p1 = scmp.lt.s32.totalorder %s173_s11, %s173_s11  ;;  %p3139_p12 = scmp.lt.s32.totalorder %s3130_s26, %s3130_s26 }
  0x24   : > { %p3133_p11 = pnand %p3131_p9, %p3121_p8 }
  0x25   : > { %p3140_p10 = por %p3139_p12, %p3138_p1 }
  0x26   : > { %p3134_p13 = pneg %p3133_p11 }
  0x28   : > { %p3141_p3 = pnand %p3140_p10, %p3134_p13 }
  0x2a   : > { %3144 = shalt.err (!%p3141_p3)
}
  0x2b   : > { %s3327_s27 = smov 64   ;;  %s3328_s5 = smov 4  }
  0x2c   : > { %s3957_s2 = sld [smem:[#allocation31_spill]]  ;;  %s3156_s28 = scalar_lea.vmem %s187_s18, 16 }
  0x2d   : > { %p3157_p4 = scmp.ne.s32.totalorder %s187_s18, %s3156_s28  ;;  %s3163_s30 = scalar_lea.vmem %s187_s18, 32 }
  0x2e   : > { %p3164_p11 = scmp.lt.s32.totalorder %s187_s18, %s187_s18  ;;  %p3165_p12 = scmp.lt.s32.totalorder %s3163_s30, %s3156_s28 }
  0x2f   : > { %p3159_p2 = pnand %p3157_p4, %p3121_p8 }
  0x30   : > { %p3166_p10 = por %p3165_p12, %p3164_p11 }
  0x31   : > { %p3160_p9 = pneg %p3159_p2 }
  0x32   : > { %2871 = dma.hbm_to_vmem [thread:$0]  (!%p3460_p5), %s3957_s2, 512, %s173_s11, [#allocation7], %s3327_s27, %s3327_s27, %s3328_s5  }
  0x33   : > { %p3167_p3 = pnand %p3166_p10, %p3160_p9 }
  0x35   : > { %3170 = shalt.err (!%p3167_p3)
}
  0x36   : > { %s3958_s3 = sld [smem:[#allocation32_spill]]  ;;  %s30_s11 = sadd.s32 1, %s3315_s23 }
  0x37   : > { %p31_p8 = scmp.ge.s32.totalorder %s30_s11, 2  ;;  %s33_s28 = sadd.s32 1, %s3319_s24 }
  0x38   : > { %s197_s30 = sand.u32 1, %s3303_s20   ;;  %s2205_s27 = sshll.u32 %s3315_s23, 2 }
  0x39   : > { %s4012_s11 = smov (%p31_p8, %s30_s11), 0  ;;  %s4014_s28 = smov (!%p31_p8, %s33_s28), %s3319_s24 }
  0x3a   : > { %3959 = sst [smem:[#allocation19_spill]] %s4012_s11  ;;  %s38_s8 = ssub.s32 %s3315_s23, %s4012_s11 }
  0x3b   : > { %p35_p13 = scmp.ge.s32.totalorder %s4014_s28, 4  ;;  %s2203_s12 = sshll.u32 %s197_s30, 9 }
  0x3c   : > { %2874 = dma.hbm_to_vmem [thread:$0]  (!%p3460_p5), %s3958_s3, 16, %s187_s18, [#allocation7]  }
  0x3d   : > { %s2387_s5 = sshll.u32 %s3319_s24, 8  ;;  %s4016_s28 = smov (%p35_p13, %s4014_s28), 0 }
  0x3e   : > { %s208_s18 = sadd.s32 %s2387_s5, %s2205_s27  ;;  %s201_s10 = scalar_lea.vmem [#allocation3], %s2203_s12 }
  0x3f   : > { %s211_s14 = sshll.u32 %s201_s10, 4  ;;  %s37_s26 = ssub.s32 %s3319_s24, %s4016_s28  ;;  %s212_s14 = int_to_ptr.vmem [resolvable:$true] %s211_s14 }
  0x40   : > { %s2207_s2 = sshll.u32 %s208_s18, 6  ;;  %s39_s3 = sor.u32 %s38_s8, %s37_s26 }
  0x41   : > { %p134_p5 = scmp.eq.s32.totalorder %s37_s26, 0  ;;  %p40_p1 = scmp.eq.s32.totalorder %s39_s3, 0 }
  0x42   : > { %s210_s4 = scalar_lea.hbm %s3914_s0, %s2207_s2  ;;  %s3960_s11 = sadd.s32 1, %s3291_s17 }
  0x43   : > { %s3508_s23 = scalar_select %p134_p5, %s3291_s17, %s3960_s11  }
  0x44   : > { %s3961_s7 = sadd.s32 1, %s3303_s20  ;;  %s198_s1 = scalar_lea.sflag [#allocation4], %s197_s30 }
  0x45   : > { %s3513_s22 = scalar_select %p40_p1, %s3303_s20, %s3961_s7  }
  0x46   : > { %p3173_p4 = pneg %p3466_p7  ;;  %s3184_s27 = scalar_lea.vmem %s212_s14, 8192 }
  0x47   : > { %p3185_p2 = scmp.ne.s32.totalorder %s212_s14, %s3184_s27  ;;  %s3329_s8 = smov [#allocation3]  }
  0x48   : > { %s3189_s3 = sshll.u32 %s3329_s8, 4  ;;  %s3190_s3 = int_to_ptr.vmem [resolvable:$false] %s3189_s3 }
  0x49   : > { %p3187_p9 = pnand %p3185_p2, %p3173_p4  ;;  %s3191_s12 = scalar_lea.vmem %s3190_s3, 16384 }
  0x4a   : > { %p3192_p12 = scmp.lt.s32.totalorder %s212_s14, %s3190_s3  ;;  %p3193_p10 = scmp.lt.s32.totalorder %s3191_s12, %s3184_s27 }
  0x4b   : > { %p3188_p11 = pneg %p3187_p9 }
  0x4c   : > { %p3194_p3 = por %p3193_p10, %p3192_p12 }
  0x4e   : > { %p3195_p8 = pnand %p3194_p3, %p3188_p11 }
  0x50   : > { %3198 = shalt.err (!%p3195_p8)
}
  0x51   : > { %s3330_s2 = smov 512   ;;  %s3331_s15 = smov 256  }
  0x52   : > { %s3332_s25 = smov 16   ;;  %232 = sbr.rel (%p3451_p0) target bundleno = 805 (0x325), region = 36 }
  0x53   : > { %2878 = dma.hbm_to_vmem [thread:$0]  (!%p3466_p7), %s210_s4, 8192, %s212_s14, %s198_s1, %s3330_s2, %s3331_s15, %s3332_s25  }
  0x57   : > { %s234_s7 = sand.u32 1, %s3299_s19  }
  0x58   : > { %s2209_s11 = sshll.u32 %s234_s7, 9  ;;  %s235_s30 = scalar_lea.sflag [#allocation4], %s234_s7 }
  0x59   : > { %s3522_s5 = scalar_lea.vmem [#allocation3], %s2209_s11 }
  0x5a   : > { %3270 = dma.done.wait (%p3435_p6), %s235_s30, 8192  }
  0x5b   : > { %3272 = vsyncadd (%p3435_p6), %s235_s30, 4294959104  ;;  %p3962_p13 = scmp.ne.s32.totalorder %s3947_s29, 0 }
  0x5d   : > { %3274 = dma.done.wait (%p3962_p13), [#allocation7], 528  }
  0x5e   : > { %3276 = vsyncadd (%p3962_p13), [#allocation7], 4294966768  ;;  %s273_s1 = sand.u32 1, %s3287_s16   ;;  %s2213_s4 = sshll.u32 %s3307_s21, 6 }
  0x5f   : > { %s2212_s9 = sshll.u32 %s273_s1, 7  ;;  %p279_p0 = scmp.lt.s32.totalorder %s2213_s4, 127 }
  0x60   : > { %s3963_s6 = sld [smem:[#allocation30_spill]]  ;;  %s3541_s26 = scalar_lea.vmem [#allocation9], %s2212_s9 }
  0x61   : > { %s4018_s4 = smov (!%p279_p0, %s2213_s4), 127  ;;  %p2215_p6 = scmp.ne.s32.totalorder %s3307_s21, 0 }
  0x62   : > { %s2214_s13 = sshll.u32 %s4018_s4, 2 }
  0x63   : > { %289 = sbr.rel (%p2215_p6) target bundleno = 121 (0x79), region = 52 }
  0x66   : > { %s3539_s14 = scalar_lea.vmem %s3963_s6, %s2214_s13 }
  0x68   : > { %v3333_v0 = vmov 0.0  }
  0x69   : > { %290 = vst [vmem:[#allocation2 + $0xb0] sm:$0xff] %v3333_v0  ;;  %291 = vst [vmem:[#allocation2] sm:$0xff] %v3333_v0 }
  0x6a   : > { %292 = vst [vmem:[#allocation2 + $0xd8] sm:$0xff] %v3333_v0  ;;  %293 = vst [vmem:[#allocation2 + $0x18] sm:$0xff] %v3333_v0 }
  0x6b   : > { %294 = vst [vmem:[#allocation2 + $0x50] sm:$0xff] %v3333_v0  ;;  %295 = vst [vmem:[#allocation2 + $0x68] sm:$0xff] %v3333_v0 }
  0x6c   : > { %296 = vst [vmem:[#allocation2 + $0x30] sm:$0xff] %v3333_v0  ;;  %297 = vst [vmem:[#allocation2 + $0x48] sm:$0xff] %v3333_v0 }
  0x6d   : > { %298 = vst [vmem:[#allocation2 + $0x80] sm:$0xff] %v3333_v0  ;;  %299 = vst [vmem:[#allocation2 + $0x88] sm:$0xff] %v3333_v0 }
  0x6e   : > { %300 = vst [vmem:[#allocation2 + $0xe8] sm:$0xff] %v3333_v0  ;;  %301 = vst [vmem:[#allocation2 + $0xb8] sm:$0xff] %v3333_v0 }
  0x6f   : > { %302 = vst [vmem:[#allocation2 + $0x60] sm:$0xff] %v3333_v0  ;;  %303 = vst [vmem:[#allocation2 + $0xf0] sm:$0xff] %v3333_v0 }
  0x70   : > { %304 = vst [vmem:[#allocation2 + $0x8] sm:$0xff] %v3333_v0  ;;  %305 = vst [vmem:[#allocation2 + $0x78] sm:$0xff] %v3333_v0 }
  0x71   : > { %306 = vst [vmem:[#allocation2 + $0x38] sm:$0xff] %v3333_v0  ;;  %307 = vst [vmem:[#allocation2 + $0x58] sm:$0xff] %v3333_v0 }
  0x72   : > { %308 = vst [vmem:[#allocation2 + $0x40] sm:$0xff] %v3333_v0  ;;  %309 = vst [vmem:[#allocation2 + $0xc8] sm:$0xff] %v3333_v0 }
  0x73   : > { %310 = vst [vmem:[#allocation2 + $0xe0] sm:$0xff] %v3333_v0  ;;  %311 = vst [vmem:[#allocation2 + $0x90] sm:$0xff] %v3333_v0 }
  0x74   : > { %312 = vst [vmem:[#allocation2 + $0x70] sm:$0xff] %v3333_v0  ;;  %313 = vst [vmem:[#allocation2 + $0xc0] sm:$0xff] %v3333_v0 }
  0x75   : > { %314 = vst [vmem:[#allocation2 + $0xa8] sm:$0xff] %v3333_v0  ;;  %315 = vst [vmem:[#allocation2 + $0xd0] sm:$0xff] %v3333_v0 }
  0x76   : > { %316 = vst [vmem:[#allocation2 + $0x10] sm:$0xff] %v3333_v0  ;;  %317 = vst [vmem:[#allocation2 + $0x28] sm:$0xff] %v3333_v0 }
  0x77   : > { %318 = vst [vmem:[#allocation2 + $0xa0] sm:$0xff] %v3333_v0  ;;  %319 = vst [vmem:[#allocation2 + $0xf8] sm:$0xff] %v3333_v0 }
  0x78   : > { %320 = vst [vmem:[#allocation2 + $0x20] sm:$0xff] %v3333_v0  ;;  %321 = vst [vmem:[#allocation2 + $0x98] sm:$0xff] %v3333_v0 }
  0x79 PF: > { %v2987_v1 = vld [vmem:[#allocation6 + $0x18] sm:$0xff]   ;;  %v2988_v2 = vld [vmem:[#allocation6 + $0x10] sm:$0xff]   ;;  %v2989_v3 = vld [vmem:[#allocation6 + $0x8] sm:$0xff]   ;;  %vm578_vm0 = vcmask 523264   ;;  %p2348_p7 = scmp.ne.s32.totalorder %s3307_s21, 1 }
  0x7a   : > { %2776 = vmatprep.subr.bf16.mxu0 %v2987_v1  ;;  %2848 = vmatprep.subr.bf16.mxu1 %v2987_v1  ;;  %v2991_v4 = vld [vmem:[%s3539_s14] sm:$0xff]   ;;  %v2993_v7 = vld [vmem:[%s3539_s14 + $0x8] sm:$0xff]   ;;  %v2995_v9 = vld [vmem:[%s3539_s14 + $0x10] sm:$0xff]  }
  0x7b   : > { %2777 = vmatpush3.bf16.msra.mxu0 %v2987_v1  ;;  %2852 = vmatpush3.bf16.msra.mxu1 %v2987_v1  ;;  %v2992_v5 = vld [vmem:[%s3539_s14 + $0x80] sm:$0xff]   ;;  %v2994_v8 = vld [vmem:[%s3539_s14 + $0x88] sm:$0xff]   ;;  %v2996_v10 = vld [vmem:[%s3539_s14 + $0x90] sm:$0xff]  }
  0x7c   : > { %2778 = vmatprep.subr.bf16.mxu0 %v2988_v2  ;;  %2849 = vmatprep.subr.bf16.mxu1 %v2988_v2  ;;  %v2990_v6 = vld [vmem:[#allocation6] sm:$0xff]   ;;  %v2997_v11 = vld [vmem:[%s3539_s14 + $0x18] sm:$0xff]   ;;  %v3001_v15 = vld [vmem:[%s3539_s14 + $0x28] sm:$0xff]  }
  0x7d   : > { %2784 = vmatprep.mubr.msk.bf16.mxu0 %vm578_vm0, %v2991_v4  ;;  %2816 = vmatprep.mubr.msk.bf16.mxu1 %vm578_vm0, %v2992_v5  ;;  %v2998_v12 = vld [vmem:[%s3539_s14 + $0x98] sm:$0xff]   ;;  %v2999_v13 = vld [vmem:[%s3539_s14 + $0x20] sm:$0xff]   ;;  %v3002_v16 = vld [vmem:[%s3539_s14 + $0xa8] sm:$0xff]  }
  0x7e   : > { %v3000_v14 = vld [vmem:[%s3539_s14 + $0xa0] sm:$0xff]   ;;  %v3003_v17 = vld [vmem:[%s3539_s14 + $0x30] sm:$0xff]   ;;  %v3005_v19 = vld [vmem:[%s3539_s14 + $0x38] sm:$0xff]  }
  0x7f   : > { %2779 = vmatpush3.bf16.msra.mxu0 %v2988_v2  ;;  %2853 = vmatpush3.bf16.msra.mxu1 %v2988_v2  ;;  %v3004_v18 = vld [vmem:[%s3539_s14 + $0xb0] sm:$0xff]   ;;  %v3006_v20 = vld [vmem:[%s3539_s14 + $0xb8] sm:$0xff]   ;;  %v3007_v21 = vld [vmem:[%s3539_s14 + $0x40] sm:$0xff]  }
  0x80   : > { %2780 = vmatprep.subr.bf16.mxu0 %v2989_v3  ;;  %2850 = vmatprep.subr.bf16.mxu1 %v2989_v3  ;;  %v3008_v22 = vld [vmem:[%s3539_s14 + $0xc0] sm:$0xff]   ;;  %v3009_v23 = vld [vmem:[%s3539_s14 + $0x48] sm:$0xff]   ;;  %v3011_v25 = vld [vmem:[%s3539_s14 + $0x50] sm:$0xff]  }
  0x81   : > { %v3010_v24 = vld [vmem:[%s3539_s14 + $0xc8] sm:$0xff]   ;;  %v3012_v26 = vld [vmem:[%s3539_s14 + $0xd0] sm:$0xff]   ;;  %v3013_v27 = vld [vmem:[%s3539_s14 + $0x58] sm:$0xff]  }
  0x82   : > { %v3014_v28 = vld [vmem:[%s3539_s14 + $0xd8] sm:$0xff]   ;;  %v3015_v29 = vld [vmem:[%s3539_s14 + $0x60] sm:$0xff]   ;;  %v3017_v31 = vld [vmem:[%s3539_s14 + $0x68] sm:$0xff]  }
  0x83   : > { %2781 = vmatpush3.bf16.msra.mxu0 %v2989_v3  ;;  %2854 = vmatpush3.bf16.msra.mxu1 %v2989_v3  ;;  %v3016_v30 = vld [vmem:[%s3539_s14 + $0xe0] sm:$0xff]   ;;  %v3018_v32 = vld [vmem:[%s3539_s14 + $0xe8] sm:$0xff]   ;;  %v3019_v33 = vld [vmem:[%s3539_s14 + $0x70] sm:$0xff]  }
  0x84   : > { %2782 = vmatprep.subr.bf16.mxu0 %v2990_v6  ;;  %2851 = vmatprep.subr.bf16.mxu1 %v2990_v6  ;;  %v3020_v34 = vld [vmem:[%s3539_s14 + $0xf0] sm:$0xff]   ;;  %v3021_v35 = vld [vmem:[%s3539_s14 + $0x78] sm:$0xff]  }
  0x85   : > { %v3022_v36 = vld [vmem:[%s3539_s14 + $0xf8] sm:$0xff]   ;;  %v3025_v37 = vld [vmem:[%s3522_s5 + $0x4] ss:$16 sps:$4 sm:$0xff]  }
  0x86   : > { %v3028_v38 = vld [vmem:[%s3522_s5 + $0xc] ss:$16 sps:$4 sm:$0xff]  }
  0x87   : > { %2783 = vmatpush3.bf16.msra.mxu0 %v2990_v6  ;;  %2855 = vmatpush3.bf16.msra.mxu1 %v2990_v6 }
  0x8a   : > { %2785 = vmatmul.mubr.msk.bf16.vlgmr.msra.gmra.mxu0 %vm578_vm0, %v2993_v7  ;;  %2817 = vmatmul.mubr.msk.bf16.vlgmr.msra.gmra.mxu1 %vm578_vm0, %v2994_v8 }
  0x8b   : > { %2788 = vmatprep.mubr.msk.bf16.mxu0 %vm578_vm0, %v2995_v9  ;;  %2820 = vmatprep.mubr.msk.bf16.mxu1 %vm578_vm0, %v2996_v10 }
  0x92   : > { %2789 = vmatmul.mubr.msk.bf16.gmra.mxu0 %vm578_vm0, %v2997_v11  ;;  %2821 = vmatmul.mubr.msk.bf16.gmra.mxu1 %vm578_vm0, %v2998_v12 }
  0x93   : > { %2792 = vmatprep.mubr.msk.bf16.mxu0 %vm578_vm0, %v2999_v13  ;;  %2824 = vmatprep.mubr.msk.bf16.mxu1 %vm578_vm0, %v3000_v14 }
  0x9a   : > { %2793 = vmatmul.mubr.msk.bf16.gmra.mxu0 %vm578_vm0, %v3001_v15  ;;  %2825 = vmatmul.mubr.msk.bf16.gmra.mxu1 %vm578_vm0, %v3002_v16 }
  0x9b   : > { %2796 = vmatprep.mubr.msk.bf16.mxu0 %vm578_vm0, %v3003_v17  ;;  %2828 = vmatprep.mubr.msk.bf16.mxu1 %vm578_vm0, %v3004_v18 }
  0xa2   : > { %2797 = vmatmul.mubr.msk.bf16.gmra.mxu0 %vm578_vm0, %v3005_v19  ;;  %2829 = vmatmul.mubr.msk.bf16.gmra.mxu1 %vm578_vm0, %v3006_v20 }
  0xa3   : > { %2800 = vmatprep.mubr.msk.bf16.mxu0 %vm578_vm0, %v3007_v21  ;;  %2832 = vmatprep.mubr.msk.bf16.mxu1 %vm578_vm0, %v3008_v22 }
  0xaa   : > { %2801 = vmatmul.mubr.msk.bf16.gmra.mxu0 %vm578_vm0, %v3009_v23  ;;  %2833 = vmatmul.mubr.msk.bf16.gmra.mxu1 %vm578_vm0, %v3010_v24 }
  0xab   : > { %2804 = vmatprep.mubr.msk.bf16.mxu0 %vm578_vm0, %v3011_v25  ;;  %2836 = vmatprep.mubr.msk.bf16.mxu1 %vm578_vm0, %v3012_v26 }
  0xb2   : > { %2805 = vmatmul.mubr.msk.bf16.gmra.mxu0 %vm578_vm0, %v3013_v27  ;;  %2837 = vmatmul.mubr.msk.bf16.gmra.mxu1 %vm578_vm0, %v3014_v28 }
  0xb3   : > { %2808 = vmatprep.mubr.msk.bf16.mxu0 %vm578_vm0, %v3015_v29  ;;  %2840 = vmatprep.mubr.msk.bf16.mxu1 %vm578_vm0, %v3016_v30 }
  0xba   : > { %2809 = vmatmul.mubr.msk.bf16.gmra.mxu0 %vm578_vm0, %v3017_v31  ;;  %2841 = vmatmul.mubr.msk.bf16.gmra.mxu1 %vm578_vm0, %v3018_v32 }
  0xbb   : > { %2812 = vmatprep.mubr.msk.bf16.mxu0 %vm578_vm0, %v3019_v33  ;;  %2844 = vmatprep.mubr.msk.bf16.mxu1 %vm578_vm0, %v3020_v34 }
  0xc2   : > { %2813 = vmatmul.mubr.msk.bf16.gmra.mxu0 %vm578_vm0, %v3021_v35  ;;  %2845 = vmatmul.mubr.msk.bf16.gmra.mxu1 %vm578_vm0, %v3022_v36 }
  0xc3   : > { %1444 = vmatprep.mubr.bf16.mxu1 %v3025_v37  ;;  %1605 = vmatprep.mubr.bf16.mxu0 %v3028_v38 }
 0x14a   : > { %v3610_v39 = vpop.f32.mrf.mxu0  ;;  %v3612_v40 = vpop.f32.mrf.mxu1 }
 0x14b   : > { %3964 = vst [vmem:[#allocation20_spill] sm:$0xff] %v3610_v39  ;;  %3965 = vst [vmem:[#allocation21_spill] sm:$0xff] %v3612_v40 }
 0x14c   : > { %v3614_v41 = vpop.f32.mrf.mxu0  ;;  %v3616_v42 = vpop.f32.mrf.mxu1 }
 0x14d   : > { %3966 = vst [vmem:[#allocation22_spill] sm:$0xff] %v3614_v41  ;;  %3967 = vst [vmem:[#allocation23_spill] sm:$0xff] %v3616_v42 }
 0x14e   : > { %v3618_v43 = vpop.f32.mrf.mxu0  ;;  %v3620_v44 = vpop.f32.mrf.mxu1 }
 0x14f   : > { %3968 = vst [vmem:[#allocation24_spill] sm:$0xff] %v3618_v43  ;;  %3969 = vst [vmem:[#allocation25_spill] sm:$0xff] %v3620_v44 }
 0x150   : > { %v3626_v47 = vpop.f32.mrf.mxu0  ;;  %v3628_v48 = vpop.f32.mrf.mxu1 }
 0x151   : > { %3970 = vst [vmem:[#allocation26_spill] sm:$0xff] %v3626_v47  ;;  %3971 = vst [vmem:[#allocation27_spill] sm:$0xff] %v3628_v48 }
 0x152   : > { %v3634_v51 = vpop.f32.mrf.mxu0  ;;  %v3636_v52 = vpop.f32.mrf.mxu1 }
 0x154   : > { %v3638_v53 = vpop.f32.mrf.mxu0  ;;  %v3640_v54 = vpop.f32.mrf.mxu1 }
 0x156   : > { %v3642_v55 = vpop.f32.mrf.mxu0  ;;  %v3644_v56 = vpop.f32.mrf.mxu1 }
 0x158   : > { %v3650_v59 = vpop.f32.mrf.mxu0  ;;  %v3652_v60 = vpop.f32.mrf.mxu1 }
 0x15a   : > { %v3658_v63 = vpop.f32.mrf.mxu0  ;;  %v3660_v0 = vpop.f32.mrf.mxu1 }
 0x15c   : > { %v3662_v1 = vpop.f32.mrf.mxu0  ;;  %v3664_v2 = vpop.f32.mrf.mxu1 }
 0x15e   : > { %v3666_v3 = vpop.f32.mrf.mxu0  ;;  %v3668_v4 = vpop.f32.mrf.mxu1 }
 0x160   : > { %v3670_v5 = vpop.f32.mrf.mxu0  ;;  %v3672_v6 = vpop.f32.mrf.mxu1 }
 0x162   : > { %v2798_v7 = vpop.f32.mrf.mxu0  ;;  %v2830_v8 = vpop.f32.mrf.mxu1 }
 0x164   : > { %v757_v9 = vpop.f32.mrf.mxu0  ;;  %v885_v10 = vpop.f32.mrf.mxu1 }
 0x166   : > { %v2799_v11 = vpop.f32.mrf.mxu0  ;;  %v2831_v12 = vpop.f32.mrf.mxu1 }
 0x167   : > { %v1067_v42 = vpack.c.bf16 %v2799_v11, %v2798_v7  ;;  %v1083_v48 = vpack.c.bf16 %v2831_v12, %v2830_v8  ;;  %v3990_v7 = vld [vmem:[#allocation23_spill] sm:$0xff] }
 0x168   : > { %v760_v13 = vpop.f32.mrf.mxu0  ;;  %v888_v14 = vpop.f32.mrf.mxu1  ;;  %v3033_v11 = vld [vmem:[%s3522_s5 + $0x20] ss:$16 sps:$4 sm:$0xff]   ;;  %v3034_v12 = vld [vmem:[%s3522_s5 + $0x28] ss:$16 sps:$4 sm:$0xff]  }
 0x169   : > { %v1066_v39 = vpack.c.bf16 %v760_v13, %v757_v9  ;;  %v1082_v43 = vpack.c.bf16 %v888_v14, %v885_v10  ;;  %v3029_v9 = vld [vmem:[%s3522_s5 + $0x24] ss:$16 sps:$4 sm:$0xff]   ;;  %v3031_v10 = vld [vmem:[%s3522_s5 + $0x2c] ss:$16 sps:$4 sm:$0xff]  }
 0x16a   : > { %v3674_v15 = vpop.f32.mrf.mxu0  ;;  %v3676_v16 = vpop.f32.mrf.mxu1  ;;  %v3035_v13 = vld [vmem:[%s3522_s5 + $0x44] ss:$16 sps:$4 sm:$0xff]   ;;  %v3037_v14 = vld [vmem:[%s3522_s5 + $0x4c] ss:$16 sps:$4 sm:$0xff]  }
 0x16c   : > { %v3678_v17 = vpop.f32.mrf.mxu0  ;;  %v3680_v18 = vpop.f32.mrf.mxu1 }
 0x16d   : > { %3972 = vst [vmem:[#allocation28_spill] sm:$0xff] %v3680_v18 }
 0x16e   : > { %v3682_v19 = vpop.f32.mrf.mxu0  ;;  %v3684_v20 = vpop.f32.mrf.mxu1 }
 0x170   : > { %v3686_v21 = vpop.f32.mrf.mxu0  ;;  %v3688_v22 = vpop.f32.mrf.mxu1 }
 0x171   : > { %3973 = vst [vmem:[#allocation29_spill] sm:$0xff] %v3688_v22 }
 0x172   : > { %v2806_v23 = vpop.f32.mrf.mxu0  ;;  %v2838_v24 = vpop.f32.mrf.mxu1 }
 0x174   : > { %v789_v25 = vpop.f32.mrf.mxu0  ;;  %v917_v26 = vpop.f32.mrf.mxu1 }
 0x176   : > { %v2807_v27 = vpop.f32.mrf.mxu0  ;;  %v2839_v28 = vpop.f32.mrf.mxu1 }
 0x178   : > { %v792_v29 = vpop.f32.mrf.mxu0  ;;  %v920_v30 = vpop.f32.mrf.mxu1 }
 0x17a   : > { %v2810_v31 = vpop.f32.mrf.mxu0  ;;  %v2842_v32 = vpop.f32.mrf.mxu1 }
 0x17c   : > { %v805_v33 = vpop.f32.mrf.mxu0  ;;  %v933_v34 = vpop.f32.mrf.mxu1 }
 0x17e   : > { %v2811_v35 = vpop.f32.mrf.mxu0  ;;  %v2843_v36 = vpop.f32.mrf.mxu1 }
 0x17f   : > { %v1073_v22 = vpack.c.bf16 %v2811_v35, %v2810_v31  ;;  %v1089_v18 = vpack.c.bf16 %v2843_v36, %v2842_v32  ;;  %v3063_v31 = vld [vmem:[%s3522_s5 + $0xc0] ss:$16 sps:$4 sm:$0xff]   ;;  %v3064_v32 = vld [vmem:[%s3522_s5 + $0xc8] ss:$16 sps:$4 sm:$0xff]  }
 0x180   : > { %v808_v37 = vpop.f32.mrf.mxu0  ;;  %v936_v38 = vpop.f32.mrf.mxu1  ;;  %v3069_v35 = vld [vmem:[%s3522_s5 + $0xe0] ss:$16 sps:$4 sm:$0xff]   ;;  %v3070_v36 = vld [vmem:[%s3522_s5 + $0xe8] ss:$16 sps:$4 sm:$0xff]  }
 0x182   : > { %v2814_v50 = vpop.f32.mrf.mxu0  ;;  %v2846_v49 = vpop.f32.mrf.mxu1 }
 0x184   : > { %v821_v46 = vpop.f32.mrf.mxu0  ;;  %v949_v45 = vpop.f32.mrf.mxu1 }
 0x186   : > { %v2815_v62 = vpop.f32.mrf.mxu0  ;;  %v2847_v61 = vpop.f32.mrf.mxu1 }
 0x187   : > { %v1075_v58 = vpack.c.bf16 %v2815_v62, %v2814_v50  ;;  %v1091_v57 = vpack.c.bf16 %v2847_v61, %v2846_v49  ;;  %v1065_v49 = vpack.c.bf16 %v3666_v3, %v3658_v63  ;;  %v3975_v50 = vpack.c.bf16 %v3644_v56, %v3636_v52  ;;  %v3979_v56 = vld [vmem:[#allocation29_spill] sm:$0xff]  ;;  %v3980_v63 = vld [vmem:[#allocation24_spill] sm:$0xff]  ;;  %v3986_v3 = vld [vmem:[#allocation26_spill] sm:$0xff] }
 0x188   : > { %v824_v41 = vpop.f32.mrf.mxu0  ;;  %v952_v47 = vpop.f32.mrf.mxu1  ;;  %v3976_v61 = vpack.c.bf16 %v3650_v59, %v3638_v53  ;;  %v1068_v52 = vpack.c.bf16 %v3686_v21, %v3678_v17  ;;  %v3983_v53 = vld [vmem:[#allocation25_spill] sm:$0xff]  ;;  %v3041_v17 = vld [vmem:[%s3522_s5 + $0x64] ss:$16 sps:$4 sm:$0xff]  }
 0x189   : > { %v1074_v40 = vpack.c.bf16 %v824_v41, %v821_v46  ;;  %v1090_v44 = vpack.c.bf16 %v952_v47, %v949_v45  ;;  %2552 = vmatprep.subr.bf16.mxu1 %v1075_v58  ;;  %2664 = vmatprep.subr.bf16.mxu0 %v1091_v57  ;;  %v1081_v41 = vpack.c.bf16 %v3668_v4, %v3660_v0  ;;  %v3981_v0 = vld [vmem:[#allocation20_spill] sm:$0xff]  ;;  %v3984_v59 = vld [vmem:[#allocation21_spill] sm:$0xff]  ;;  %v3987_v4 = vld [vmem:[#allocation22_spill] sm:$0xff] }
 0x18a   : > { %2553 = vmatpush3.bf16.msra.mxu1 %v1067_v42  ;;  %2665 = vmatpush3.bf16.msra.mxu0 %v1083_v48  ;;  %v1072_v45 = vpack.c.bf16 %v808_v37, %v805_v33  ;;  %v1088_v46 = vpack.c.bf16 %v936_v38, %v933_v34  ;;  %v1071_v42 = vpack.c.bf16 %v2807_v27, %v2806_v23  ;;  %v3047_v21 = vld [vmem:[%s3522_s5 + $0x84] ss:$16 sps:$4 sm:$0xff]   ;;  %v3051_v23 = vld [vmem:[%s3522_s5 + $0x80] ss:$16 sps:$4 sm:$0xff]   ;;  %v3067_v34 = vld [vmem:[%s3522_s5 + $0xec] ss:$16 sps:$4 sm:$0xff]  }
 0x18b   : > { %2554 = vmatprep.subr.bf16.mxu1 %v1074_v40  ;;  %2666 = vmatprep.subr.bf16.mxu0 %v1090_v44  ;;  %v1064_v40 = vpack.c.bf16 %v3670_v5, %v3662_v1  ;;  %v1070_v44 = vpack.c.bf16 %v792_v29, %v789_v25  ;;  %v1086_v47 = vpack.c.bf16 %v920_v30, %v917_v26  ;;  %v3053_v25 = vld [vmem:[%s3522_s5 + $0xa4] ss:$16 sps:$4 sm:$0xff]   ;;  %v3055_v26 = vld [vmem:[%s3522_s5 + $0xac] ss:$16 sps:$4 sm:$0xff]   ;;  %v3057_v27 = vld [vmem:[%s3522_s5 + $0xa0] ss:$16 sps:$4 sm:$0xff]  }
 0x18c   : > { %v3974_v48 = vpack.c.bf16 %v3642_v55, %v3634_v51  ;;  %v1069_v57 = vpack.c.bf16 %v3682_v19, %v3674_v15  ;;  %v1085_v58 = vpack.c.bf16 %v3684_v20, %v3676_v16  ;;  %v3977_v51 = vpack.c.bf16 %v3652_v60, %v3640_v54  ;;  %v3978_v55 = vld [vmem:[#allocation28_spill] sm:$0xff]  ;;  %v3061_v30 = vld [vmem:[%s3522_s5 + $0xcc] ss:$16 sps:$4 sm:$0xff]  }
 0x18d   : > { %v1084_v62 = vpack.c.bf16 %v3979_v56, %v3978_v55  ;;  %v3982_v1 = vpack.c.bf16 %v3980_v63, %v3981_v0  ;;  %v3023_v54 = vld [vmem:[%s3522_s5] ss:$16 sps:$4 sm:$0xff]   ;;  %v3026_v60 = vld [vmem:[%s3522_s5 + $0x8] ss:$16 sps:$4 sm:$0xff]   ;;  %v3988_v5 = vpack.c.bf16 %v3986_v3, %v3987_v4  ;;  %v3059_v29 = vld [vmem:[%s3522_s5 + $0xc4] ss:$16 sps:$4 sm:$0xff]  }
 0x18e   : > { %2555 = vmatpush3.bf16.msra.mxu1 %v1066_v39  ;;  %2667 = vmatpush3.bf16.msra.mxu0 %v1082_v43  ;;  %v1080_v39 = vpack.c.bf16 %v3672_v6, %v3664_v2  ;;  %v1087_v43 = vpack.c.bf16 %v2839_v28, %v2838_v24  ;;  %v3985_v2 = vpack.c.bf16 %v3983_v53, %v3984_v59  ;;  %v3989_v6 = vld [vmem:[#allocation27_spill] sm:$0xff]  ;;  %v3065_v33 = vld [vmem:[%s3522_s5 + $0xe4] ss:$16 sps:$4 sm:$0xff]  }
 0x18f   : > { %2556 = vmatprep.subr.bf16.mxu1 %v1073_v22  ;;  %2668 = vmatprep.subr.bf16.mxu0 %v1089_v18  ;;  %v3991_v8 = vpack.c.bf16 %v3989_v6, %v3990_v7  ;;  %v3039_v15 = vld [vmem:[%s3522_s5 + $0x40] ss:$16 sps:$4 sm:$0xff]   ;;  %v3040_v16 = vld [vmem:[%s3522_s5 + $0x48] ss:$16 sps:$4 sm:$0xff]   ;;  %v3043_v18 = vld [vmem:[%s3522_s5 + $0x6c] ss:$16 sps:$4 sm:$0xff]  }
 0x190   : > { %v3045_v19 = vld [vmem:[%s3522_s5 + $0x60] ss:$16 sps:$4 sm:$0xff]   ;;  %v3046_v20 = vld [vmem:[%s3522_s5 + $0x68] ss:$16 sps:$4 sm:$0xff]   ;;  %v3049_v22 = vld [vmem:[%s3522_s5 + $0x8c] ss:$16 sps:$4 sm:$0xff]  }
 0x191   : > { %v3052_v24 = vld [vmem:[%s3522_s5 + $0x88] ss:$16 sps:$4 sm:$0xff]   ;;  %v3071_v37 = vld [vmem:[%s3522_s5 + $0x104] ss:$16 sps:$4 sm:$0xff]   ;;  %v3073_v38 = vld [vmem:[%s3522_s5 + $0x10c] ss:$16 sps:$4 sm:$0xff]  }
 0x192   : > { %2557 = vmatpush3.bf16.msra.mxu1 %v1065_v49  ;;  %2669 = vmatpush3.bf16.msra.mxu0 %v1081_v41  ;;  %v3058_v28 = vld [vmem:[%s3522_s5 + $0xa8] ss:$16 sps:$4 sm:$0xff]   ;;  %v3075_v49 = vld [vmem:[%s3522_s5 + $0x100] ss:$16 sps:$4 sm:$0xff]   ;;  %v3101_v56 = vld [vmem:[%s3522_s5 + $0x1a4] ss:$16 sps:$4 sm:$0xff]  }
 0x193   : > { %2558 = vmatprep.subr.bf16.mxu1 %v1072_v45  ;;  %2670 = vmatprep.subr.bf16.mxu0 %v1088_v46  ;;  %v3076_v41 = vld [vmem:[%s3522_s5 + $0x108] ss:$16 sps:$4 sm:$0xff]   ;;  %v3077_v45 = vld [vmem:[%s3522_s5 + $0x124] ss:$16 sps:$4 sm:$0xff]   ;;  %v3079_v46 = vld [vmem:[%s3522_s5 + $0x12c] ss:$16 sps:$4 sm:$0xff]  }
 0x194   : > { %v3100_v55 = vld [vmem:[%s3522_s5 + $0x188] ss:$16 sps:$4 sm:$0xff]   ;;  %v3105_v63 = vld [vmem:[%s3522_s5 + $0x1a0] ss:$16 sps:$4 sm:$0xff]   ;;  %v3109_v53 = vld [vmem:[%s3522_s5 + $0x1cc] ss:$16 sps:$4 sm:$0xff]  }
 0x195   : > { %v3106_v0 = vld [vmem:[%s3522_s5 + $0x1a8] ss:$16 sps:$4 sm:$0xff]   ;;  %v3111_v59 = vld [vmem:[%s3522_s5 + $0x1c0] ss:$16 sps:$4 sm:$0xff]  }
 0x196   : > { %2559 = vmatpush3.bf16.msra.mxu1 %v1064_v40  ;;  %2671 = vmatpush3.bf16.msra.mxu0 %v1080_v39  ;;  %v3081_v40 = vld [vmem:[%s3522_s5 + $0x120] ss:$16 sps:$4 sm:$0xff]   ;;  %v3082_v39 = vld [vmem:[%s3522_s5 + $0x128] ss:$16 sps:$4 sm:$0xff]  }
 0x197   : > { %2560 = vmatprep.subr.bf16.mxu1 %v1071_v42  ;;  %2672 = vmatprep.subr.bf16.mxu0 %v1087_v43  ;;  %v3083_v42 = vld [vmem:[%s3522_s5 + $0x144] ss:$16 sps:$4 sm:$0xff]   ;;  %v3085_v43 = vld [vmem:[%s3522_s5 + $0x14c] ss:$16 sps:$4 sm:$0xff]   ;;  %v3117_v3 = vld [vmem:[%s3522_s5 + $0x1e0] ss:$16 sps:$4 sm:$0xff]  }
 0x198   : > { %v3118_v4 = vld [vmem:[%s3522_s5 + $0x1e8] ss:$16 sps:$4 sm:$0xff]  }
 0x19a   : > { %2561 = vmatpush3.bf16.msra.mxu1 %v3974_v48  ;;  %2673 = vmatpush3.bf16.msra.mxu0 %v3975_v50  ;;  %v3089_v48 = vld [vmem:[%s3522_s5 + $0x164] ss:$16 sps:$4 sm:$0xff]   ;;  %v3091_v50 = vld [vmem:[%s3522_s5 + $0x16c] ss:$16 sps:$4 sm:$0xff]  }
 0x19b   : > { %2562 = vmatprep.subr.bf16.mxu1 %v1070_v44  ;;  %2674 = vmatprep.subr.bf16.mxu0 %v1086_v47  ;;  %v3087_v44 = vld [vmem:[%s3522_s5 + $0x140] ss:$16 sps:$4 sm:$0xff]   ;;  %v3088_v47 = vld [vmem:[%s3522_s5 + $0x148] ss:$16 sps:$4 sm:$0xff]  }
 0x19e   : > { %2563 = vmatpush3.bf16.msra.mxu1 %v3976_v61  ;;  %2675 = vmatpush3.bf16.msra.mxu0 %v3977_v51  ;;  %v3095_v61 = vld [vmem:[%s3522_s5 + $0x184] ss:$16 sps:$4 sm:$0xff]   ;;  %v3097_v51 = vld [vmem:[%s3522_s5 + $0x18c] ss:$16 sps:$4 sm:$0xff]  }
 0x19f   : > { %2564 = vmatprep.subr.bf16.mxu1 %v1069_v57  ;;  %2676 = vmatprep.subr.bf16.mxu0 %v1085_v58  ;;  %v3093_v57 = vld [vmem:[%s3522_s5 + $0x160] ss:$16 sps:$4 sm:$0xff]   ;;  %v3094_v58 = vld [vmem:[%s3522_s5 + $0x168] ss:$16 sps:$4 sm:$0xff]  }
 0x1a2   : > { %2565 = vmatpush3.bf16.msra.mxu1 %v3982_v1  ;;  %2677 = vmatpush3.bf16.msra.mxu0 %v3985_v2  ;;  %v3107_v1 = vld [vmem:[%s3522_s5 + $0x1c4] ss:$16 sps:$4 sm:$0xff]   ;;  %v3112_v2 = vld [vmem:[%s3522_s5 + $0x1c8] ss:$16 sps:$4 sm:$0xff]  }
 0x1a3   : > { %2566 = vmatprep.subr.bf16.mxu1 %v1068_v52  ;;  %2678 = vmatprep.subr.bf16.mxu0 %v1084_v62  ;;  %v3099_v52 = vld [vmem:[%s3522_s5 + $0x180] ss:$16 sps:$4 sm:$0xff]   ;;  %v3103_v62 = vld [vmem:[%s3522_s5 + $0x1ac] ss:$16 sps:$4 sm:$0xff]  }
 0x1a6   : > { %2567 = vmatpush3.bf16.msra.mxu1 %v3988_v5  ;;  %2679 = vmatpush3.bf16.msra.mxu0 %v3991_v8 }
 0x1a9   : > { %1445 = vmatmul.mubr.bf16.vlgmr.msra.gmra.mxu1 %v3023_v54  ;;  %1606 = vmatmul.mubr.bf16.vlgmr.msra.gmra.mxu0 %v3026_v60  ;;  %v3113_v54 = vld [vmem:[%s3522_s5 + $0x1e4] ss:$16 sps:$4 sm:$0xff]   ;;  %v3115_v60 = vld [vmem:[%s3522_s5 + $0x1ec] ss:$16 sps:$4 sm:$0xff]  }
 0x1aa   : > { %1452 = vmatprep.mubr.bf16.mxu1 %v3029_v9  ;;  %1613 = vmatprep.mubr.bf16.mxu0 %v3031_v10 }
 0x1b1   : > { %1453 = vmatmul.mubr.bf16.gmra.mxu1 %v3033_v11  ;;  %1614 = vmatmul.mubr.bf16.gmra.mxu0 %v3034_v12  ;;  %v964_v11 = vld [vmem:[#allocation2 + $0xb0] sm:$0xff] }
 0x1b2   : > { %1460 = vmatprep.mubr.bf16.mxu1 %v3035_v13  ;;  %1621 = vmatprep.mubr.bf16.mxu0 %v3037_v14 }
 0x1b9   : > { %1461 = vmatmul.mubr.bf16.gmra.mxu1 %v3039_v15  ;;  %1622 = vmatmul.mubr.bf16.gmra.mxu0 %v3040_v16 }
 0x1ba   : > { %1468 = vmatprep.mubr.bf16.mxu1 %v3041_v17  ;;  %1629 = vmatprep.mubr.bf16.mxu0 %v3043_v18 }
 0x1c1   : > { %1469 = vmatmul.mubr.bf16.gmra.mxu1 %v3045_v19  ;;  %1630 = vmatmul.mubr.bf16.gmra.mxu0 %v3046_v20  ;;  %v965_v20 = vld [vmem:[#allocation2] sm:$0xff] }
 0x1c2   : > { %1476 = vmatprep.mubr.bf16.mxu1 %v3047_v21  ;;  %1637 = vmatprep.mubr.bf16.mxu0 %v3049_v22 }
 0x1c9   : > { %1477 = vmatmul.mubr.bf16.gmra.mxu1 %v3051_v23  ;;  %1638 = vmatmul.mubr.bf16.gmra.mxu0 %v3052_v24 }
 0x1ca   : > { %1484 = vmatprep.mubr.bf16.mxu1 %v3053_v25  ;;  %1645 = vmatprep.mubr.bf16.mxu0 %v3055_v26 }
 0x1d1   : > { %1485 = vmatmul.mubr.bf16.gmra.mxu1 %v3057_v27  ;;  %1646 = vmatmul.mubr.bf16.gmra.mxu0 %v3058_v28 }
 0x1d2   : > { %1492 = vmatprep.mubr.bf16.mxu1 %v3059_v29  ;;  %1653 = vmatprep.mubr.bf16.mxu0 %v3061_v30  ;;  %v966_v29 = vld [vmem:[#allocation2 + $0xd8] sm:$0xff] }
 0x1d9   : > { %1493 = vmatmul.mubr.bf16.gmra.mxu1 %v3063_v31  ;;  %1654 = vmatmul.mubr.bf16.gmra.mxu0 %v3064_v32 }
 0x1da   : > { %1500 = vmatprep.mubr.bf16.mxu1 %v3065_v33  ;;  %1661 = vmatprep.mubr.bf16.mxu0 %v3067_v34 }
 0x1e1   : > { %1501 = vmatmul.mubr.bf16.gmra.mxu1 %v3069_v35  ;;  %1662 = vmatmul.mubr.bf16.gmra.mxu0 %v3070_v36 }
 0x1e2   : > { %1508 = vmatprep.mubr.bf16.mxu1 %v3071_v37  ;;  %1669 = vmatprep.mubr.bf16.mxu0 %v3073_v38  ;;  %v967_v38 = vld [vmem:[#allocation2 + $0x18] sm:$0xff] }
 0x1e9   : > { %1509 = vmatmul.mubr.bf16.gmra.mxu1 %v3075_v49  ;;  %1670 = vmatmul.mubr.bf16.gmra.mxu0 %v3076_v41 }
 0x1ea   : > { %1516 = vmatprep.mubr.bf16.mxu1 %v3077_v45  ;;  %1677 = vmatprep.mubr.bf16.mxu0 %v3079_v46 }
 0x1f1   : > { %1517 = vmatmul.mubr.bf16.gmra.mxu1 %v3081_v40  ;;  %1678 = vmatmul.mubr.bf16.gmra.mxu0 %v3082_v39 }
 0x1f2   : > { %1524 = vmatprep.mubr.bf16.mxu1 %v3083_v42  ;;  %1685 = vmatprep.mubr.bf16.mxu0 %v3085_v43 }
 0x1f9   : > { %1525 = vmatmul.mubr.bf16.gmra.mxu1 %v3087_v44  ;;  %1686 = vmatmul.mubr.bf16.gmra.mxu0 %v3088_v47  ;;  %v968_v44 = vld [vmem:[#allocation2 + $0x50] sm:$0xff] }
 0x1fa   : > { %1532 = vmatprep.mubr.bf16.mxu1 %v3089_v48  ;;  %1693 = vmatprep.mubr.bf16.mxu0 %v3091_v50 }
 0x201   : > { %1533 = vmatmul.mubr.bf16.gmra.mxu1 %v3093_v57  ;;  %1694 = vmatmul.mubr.bf16.gmra.mxu0 %v3094_v58 }
 0x202   : > { %1540 = vmatprep.mubr.bf16.mxu1 %v3095_v61  ;;  %1701 = vmatprep.mubr.bf16.mxu0 %v3097_v51 }
 0x209   : > { %1541 = vmatmul.mubr.bf16.gmra.mxu1 %v3099_v52  ;;  %1702 = vmatmul.mubr.bf16.gmra.mxu0 %v3100_v55  ;;  %v969_v55 = vld [vmem:[#allocation2 + $0x68] sm:$0xff] }
 0x20a   : > { %1548 = vmatprep.mubr.bf16.mxu1 %v3101_v56  ;;  %1709 = vmatprep.mubr.bf16.mxu0 %v3103_v62 }
 0x211   : > { %1549 = vmatmul.mubr.bf16.gmra.mxu1 %v3105_v63  ;;  %1710 = vmatmul.mubr.bf16.gmra.mxu0 %v3106_v0 }
 0x212   : > { %1556 = vmatprep.mubr.bf16.mxu1 %v3107_v1  ;;  %1717 = vmatprep.mubr.bf16.mxu0 %v3109_v53 }
 0x219   : > { %1557 = vmatmul.mubr.bf16.gmra.mxu1 %v3111_v59  ;;  %1718 = vmatmul.mubr.bf16.gmra.mxu0 %v3112_v2 }
 0x21a   : > { %1564 = vmatprep.mubr.bf16.mxu1 %v3113_v54  ;;  %1725 = vmatprep.mubr.bf16.mxu0 %v3115_v60  ;;  %v970_v54 = vld [vmem:[#allocation2 + $0x30] sm:$0xff] }
 0x221   : > { %1565 = vmatmul.mubr.bf16.gmra.mxu1 %v3117_v3  ;;  %1726 = vmatmul.mubr.bf16.gmra.mxu0 %v3118_v4 }
 0x269   : > { %v2568_v5 = vpop.f32.mrf.mxu1  ;;  %v2680_v6 = vpop.f32.mrf.mxu0 }
 0x26b   : > { %v2569_v7 = vpop.f32.mrf.mxu1  ;;  %v2681_v8 = vpop.f32.mrf.mxu0 }
 0x26c   : > { %v2570_v9 = vadd.f32 %v2569_v7, %v2568_v5  ;;  %v2682_v10 = vadd.f32 %v2681_v8, %v2680_v6 }
 0x26d   : > { %v2571_v12 = vpop.f32.mrf.mxu1  ;;  %v2683_v13 = vpop.f32.mrf.mxu0 }
 0x26e   : > { %v1608_v14 = vadd.f32 %v2682_v10, %v2570_v9  ;;  %v971_v10 = vld [vmem:[#allocation2 + $0x48] sm:$0xff] }
 0x26f   : > { %v2572_v15 = vpop.f32.mrf.mxu1  ;;  %v2684_v16 = vpop.f32.mrf.mxu0 }
 0x270   : > { %v1734_v17 = vadd.f32 %v1608_v14, %v964_v11  ;;  %v2573_v18 = vadd.f32 %v2572_v15, %v2571_v12  ;;  %v2685_v19 = vadd.f32 %v2684_v16, %v2683_v13 }
 0x271   : > { %v2574_v21 = vpop.f32.mrf.mxu1  ;;  %v2686_v22 = vpop.f32.mrf.mxu0 }
 0x272   : > { %1766 = vst [vmem:[#allocation2 + $0xb0] sm:$0xff] %v1734_v17  ;;  %v1611_v23 = vadd.f32 %v2685_v19, %v2573_v18  ;;  %v972_v19 = vld [vmem:[#allocation2 + $0x80] sm:$0xff] }
 0x273   : > { %v2575_v24 = vpop.f32.mrf.mxu1  ;;  %v2687_v25 = vpop.f32.mrf.mxu0 }
 0x274   : > { %v1735_v26 = vadd.f32 %v1611_v23, %v965_v20  ;;  %v2576_v27 = vadd.f32 %v2575_v24, %v2574_v21  ;;  %v2688_v28 = vadd.f32 %v2687_v25, %v2686_v22 }
 0x275   : > { %v2577_v30 = vpop.f32.mrf.mxu1  ;;  %v2689_v31 = vpop.f32.mrf.mxu0 }
 0x276   : > { %1767 = vst [vmem:[#allocation2] sm:$0xff] %v1735_v26  ;;  %v1616_v32 = vadd.f32 %v2688_v28, %v2576_v27  ;;  %v973_v28 = vld [vmem:[#allocation2 + $0x88] sm:$0xff] }
 0x277   : > { %v2578_v33 = vpop.f32.mrf.mxu1  ;;  %v2690_v34 = vpop.f32.mrf.mxu0 }
 0x278   : > { %v1736_v35 = vadd.f32 %v1616_v32, %v966_v29  ;;  %v2579_v36 = vadd.f32 %v2578_v33, %v2577_v30  ;;  %v2691_v37 = vadd.f32 %v2690_v34, %v2689_v31 }
 0x279   : > { %v2580_v49 = vpop.f32.mrf.mxu1  ;;  %v2692_v41 = vpop.f32.mrf.mxu0 }
 0x27a   : > { %1768 = vst [vmem:[#allocation2 + $0xd8] sm:$0xff] %v1736_v35  ;;  %v1619_v45 = vadd.f32 %v2691_v37, %v2579_v36  ;;  %v974_v37 = vld [vmem:[#allocation2 + $0xe8] sm:$0xff] }
 0x27b   : > { %v2581_v46 = vpop.f32.mrf.mxu1  ;;  %v2693_v40 = vpop.f32.mrf.mxu0 }
 0x27c   : > { %v1737_v39 = vadd.f32 %v1619_v45, %v967_v38  ;;  %v2582_v42 = vadd.f32 %v2581_v46, %v2580_v49  ;;  %v2694_v43 = vadd.f32 %v2693_v40, %v2692_v41 }
 0x27d   : > { %v2583_v47 = vpop.f32.mrf.mxu1  ;;  %v2695_v48 = vpop.f32.mrf.mxu0 }
 0x27e   : > { %1769 = vst [vmem:[#allocation2 + $0x18] sm:$0xff] %v1737_v39  ;;  %v1624_v50 = vadd.f32 %v2694_v43, %v2582_v42  ;;  %v975_v43 = vld [vmem:[#allocation2 + $0xb8] sm:$0xff] }
 0x27f   : > { %v2584_v57 = vpop.f32.mrf.mxu1  ;;  %v2696_v58 = vpop.f32.mrf.mxu0 }
 0x280   : > { %v1738_v61 = vadd.f32 %v1624_v50, %v968_v44  ;;  %v2585_v51 = vadd.f32 %v2584_v57, %v2583_v47  ;;  %v2697_v52 = vadd.f32 %v2696_v58, %v2695_v48 }
 0x281   : > { %v2586_v56 = vpop.f32.mrf.mxu1  ;;  %v2698_v62 = vpop.f32.mrf.mxu0 }
 0x282   : > { %1770 = vst [vmem:[#allocation2 + $0x50] sm:$0xff] %v1738_v61  ;;  %v1627_v63 = vadd.f32 %v2697_v52, %v2585_v51  ;;  %v976_v52 = vld [vmem:[#allocation2 + $0x60] sm:$0xff] }
 0x283   : > { %v2587_v0 = vpop.f32.mrf.mxu1  ;;  %v2699_v1 = vpop.f32.mrf.mxu0 }
 0x284   : > { %v1739_v53 = vadd.f32 %v1627_v63, %v969_v55  ;;  %v2588_v59 = vadd.f32 %v2587_v0, %v2586_v56  ;;  %v2700_v2 = vadd.f32 %v2699_v1, %v2698_v62 }
 0x285   : > { %v2589_v60 = vpop.f32.mrf.mxu1  ;;  %v2701_v3 = vpop.f32.mrf.mxu0 }
 0x286   : > { %1771 = vst [vmem:[#allocation2 + $0x68] sm:$0xff] %v1739_v53  ;;  %v1632_v4 = vadd.f32 %v2700_v2, %v2588_v59  ;;  %v977_v2 = vld [vmem:[#allocation2 + $0xf0] sm:$0xff] }
 0x287   : > { %v2590_v5 = vpop.f32.mrf.mxu1  ;;  %v2702_v6 = vpop.f32.mrf.mxu0 }
 0x288   : > { %v1740_v7 = vadd.f32 %v1632_v4, %v970_v54  ;;  %v2591_v8 = vadd.f32 %v2590_v5, %v2589_v60  ;;  %v2703_v9 = vadd.f32 %v2702_v6, %v2701_v3 }
 0x289   : > { %v2592_v11 = vpop.f32.mrf.mxu1  ;;  %v2704_v12 = vpop.f32.mrf.mxu0 }
 0x28a   : > { %1772 = vst [vmem:[#allocation2 + $0x30] sm:$0xff] %v1740_v7  ;;  %v1635_v13 = vadd.f32 %v2703_v9, %v2591_v8  ;;  %v978_v9 = vld [vmem:[#allocation2 + $0x8] sm:$0xff] }
 0x28b   : > { %v2593_v14 = vpop.f32.mrf.mxu1  ;;  %v2705_v15 = vpop.f32.mrf.mxu0 }
 0x28c   : > { %v1741_v16 = vadd.f32 %v1635_v13, %v971_v10  ;;  %v2594_v17 = vadd.f32 %v2593_v14, %v2592_v11  ;;  %v2706_v18 = vadd.f32 %v2705_v15, %v2704_v12 }
 0x28d   : > { %v2595_v20 = vpop.f32.mrf.mxu1  ;;  %v2707_v21 = vpop.f32.mrf.mxu0 }
 0x28e   : > { %1773 = vst [vmem:[#allocation2 + $0x48] sm:$0xff] %v1741_v16  ;;  %v1640_v22 = vadd.f32 %v2706_v18, %v2594_v17  ;;  %v979_v18 = vld [vmem:[#allocation2 + $0x78] sm:$0xff] }
 0x28f   : > { %v2596_v23 = vpop.f32.mrf.mxu1  ;;  %v2708_v24 = vpop.f32.mrf.mxu0 }
 0x290   : > { %v1742_v25 = vadd.f32 %v1640_v22, %v972_v19  ;;  %v2597_v26 = vadd.f32 %v2596_v23, %v2595_v20  ;;  %v2709_v27 = vadd.f32 %v2708_v24, %v2707_v21 }
 0x291   : > { %v2598_v29 = vpop.f32.mrf.mxu1  ;;  %v2710_v30 = vpop.f32.mrf.mxu0 }
 0x292   : > { %1774 = vst [vmem:[#allocation2 + $0x80] sm:$0xff] %v1742_v25  ;;  %v1643_v31 = vadd.f32 %v2709_v27, %v2597_v26  ;;  %v980_v27 = vld [vmem:[#allocation2 + $0x38] sm:$0xff] }
 0x293   : > { %v2599_v32 = vpop.f32.mrf.mxu1  ;;  %v2711_v33 = vpop.f32.mrf.mxu0 }
 0x294   : > { %v1743_v34 = vadd.f32 %v1643_v31, %v973_v28  ;;  %v2600_v35 = vadd.f32 %v2599_v32, %v2598_v29  ;;  %v2712_v36 = vadd.f32 %v2711_v33, %v2710_v30 }
 0x295   : > { %v2601_v38 = vpop.f32.mrf.mxu1  ;;  %v2713_v49 = vpop.f32.mrf.mxu0 }
 0x296   : > { %1775 = vst [vmem:[#allocation2 + $0x88] sm:$0xff] %v1743_v34  ;;  %v1648_v41 = vadd.f32 %v2712_v36, %v2600_v35  ;;  %v981_v36 = vld [vmem:[#allocation2 + $0x58] sm:$0xff] }
 0x297   : > { %v2602_v45 = vpop.f32.mrf.mxu1  ;;  %v2714_v46 = vpop.f32.mrf.mxu0 }
 0x298   : > { %v1744_v40 = vadd.f32 %v1648_v41, %v974_v37  ;;  %v2603_v39 = vadd.f32 %v2602_v45, %v2601_v38  ;;  %v2715_v42 = vadd.f32 %v2714_v46, %v2713_v49 }
 0x299   : > { %v2604_v44 = vpop.f32.mrf.mxu1  ;;  %v2716_v47 = vpop.f32.mrf.mxu0 }
 0x29a   : > { %1776 = vst [vmem:[#allocation2 + $0xe8] sm:$0xff] %v1744_v40  ;;  %v1651_v48 = vadd.f32 %v2715_v42, %v2603_v39  ;;  %v982_v42 = vld [vmem:[#allocation2 + $0x40] sm:$0xff] }
 0x29b   : > { %v2605_v50 = vpop.f32.mrf.mxu1  ;;  %v2717_v57 = vpop.f32.mrf.mxu0 }
 0x29c   : > { %v1745_v58 = vadd.f32 %v1651_v48, %v975_v43  ;;  %v2606_v61 = vadd.f32 %v2605_v50, %v2604_v44  ;;  %v2718_v51 = vadd.f32 %v2717_v57, %v2716_v47 }
 0x29d   : > { %v2607_v55 = vpop.f32.mrf.mxu1  ;;  %v2719_v56 = vpop.f32.mrf.mxu0 }
 0x29e   : > { %1777 = vst [vmem:[#allocation2 + $0xb8] sm:$0xff] %v1745_v58  ;;  %v1656_v62 = vadd.f32 %v2718_v51, %v2606_v61  ;;  %v983_v51 = vld [vmem:[#allocation2 + $0xc8] sm:$0xff] }
 0x29f   : > { %v2608_v63 = vpop.f32.mrf.mxu1  ;;  %v2720_v0 = vpop.f32.mrf.mxu0 }
 0x2a0   : > { %v1746_v1 = vadd.f32 %v1656_v62, %v976_v52  ;;  %v2609_v53 = vadd.f32 %v2608_v63, %v2607_v55  ;;  %v2721_v59 = vadd.f32 %v2720_v0, %v2719_v56 }
 0x2a1   : > { %v2610_v54 = vpop.f32.mrf.mxu1  ;;  %v2722_v60 = vpop.f32.mrf.mxu0 }
 0x2a2   : > { %1778 = vst [vmem:[#allocation2 + $0x60] sm:$0xff] %v1746_v1  ;;  %v1659_v3 = vadd.f32 %v2721_v59, %v2609_v53  ;;  %v984_v59 = vld [vmem:[#allocation2 + $0xe0] sm:$0xff] }
 0x2a3   : > { %v2611_v4 = vpop.f32.mrf.mxu1  ;;  %v2723_v5 = vpop.f32.mrf.mxu0 }
 0x2a4   : > { %v1747_v6 = vadd.f32 %v1659_v3, %v977_v2  ;;  %v2612_v7 = vadd.f32 %v2611_v4, %v2610_v54  ;;  %v2724_v8 = vadd.f32 %v2723_v5, %v2722_v60 }
 0x2a5   : > { %v2613_v10 = vpop.f32.mrf.mxu1  ;;  %v2725_v11 = vpop.f32.mrf.mxu0 }
 0x2a6   : > { %1779 = vst [vmem:[#allocation2 + $0xf0] sm:$0xff] %v1747_v6  ;;  %v1664_v12 = vadd.f32 %v2724_v8, %v2612_v7  ;;  %v985_v8 = vld [vmem:[#allocation2 + $0x90] sm:$0xff] }
 0x2a7   : > { %v2614_v13 = vpop.f32.mrf.mxu1  ;;  %v2726_v14 = vpop.f32.mrf.mxu0 }
 0x2a8   : > { %v1748_v15 = vadd.f32 %v1664_v12, %v978_v9  ;;  %v2615_v16 = vadd.f32 %v2614_v13, %v2613_v10  ;;  %v2727_v17 = vadd.f32 %v2726_v14, %v2725_v11 }
 0x2a9   : > { %v2616_v19 = vpop.f32.mrf.mxu1  ;;  %v2728_v20 = vpop.f32.mrf.mxu0 }
 0x2aa   : > { %1780 = vst [vmem:[#allocation2 + $0x8] sm:$0xff] %v1748_v15  ;;  %v1667_v21 = vadd.f32 %v2727_v17, %v2615_v16  ;;  %v986_v17 = vld [vmem:[#allocation2 + $0x70] sm:$0xff] }
 0x2ab   : > { %v2617_v22 = vpop.f32.mrf.mxu1  ;;  %v2729_v23 = vpop.f32.mrf.mxu0 }
 0x2ac   : > { %v1749_v24 = vadd.f32 %v1667_v21, %v979_v18  ;;  %v2618_v25 = vadd.f32 %v2617_v22, %v2616_v19  ;;  %v2730_v26 = vadd.f32 %v2729_v23, %v2728_v20 }
 0x2ad   : > { %v2619_v28 = vpop.f32.mrf.mxu1  ;;  %v2731_v29 = vpop.f32.mrf.mxu0 }
 0x2ae   : > { %1781 = vst [vmem:[#allocation2 + $0x78] sm:$0xff] %v1749_v24  ;;  %v1672_v30 = vadd.f32 %v2730_v26, %v2618_v25  ;;  %v987_v26 = vld [vmem:[#allocation2 + $0xc0] sm:$0xff] }
 0x2af   : > { %v2620_v31 = vpop.f32.mrf.mxu1  ;;  %v2732_v32 = vpop.f32.mrf.mxu0 }
 0x2b0   : > { %v1750_v33 = vadd.f32 %v1672_v30, %v980_v27  ;;  %v2621_v34 = vadd.f32 %v2620_v31, %v2619_v28  ;;  %v2733_v35 = vadd.f32 %v2732_v32, %v2731_v29 }
 0x2b1   : > { %v2622_v37 = vpop.f32.mrf.mxu1  ;;  %v2734_v38 = vpop.f32.mrf.mxu0 }
 0x2b2   : > { %1782 = vst [vmem:[#allocation2 + $0x38] sm:$0xff] %v1750_v33  ;;  %v1675_v49 = vadd.f32 %v2733_v35, %v2621_v34  ;;  %v988_v35 = vld [vmem:[#allocation2 + $0xa8] sm:$0xff] }
 0x2b3   : > { %v2623_v41 = vpop.f32.mrf.mxu1  ;;  %v2735_v45 = vpop.f32.mrf.mxu0 }
 0x2b4   : > { %v1751_v46 = vadd.f32 %v1675_v49, %v981_v36  ;;  %v2624_v40 = vadd.f32 %v2623_v41, %v2622_v37  ;;  %v2736_v39 = vadd.f32 %v2735_v45, %v2734_v38 }
 0x2b5   : > { %v2625_v43 = vpop.f32.mrf.mxu1  ;;  %v2737_v44 = vpop.f32.mrf.mxu0 }
 0x2b6   : > { %1783 = vst [vmem:[#allocation2 + $0x58] sm:$0xff] %v1751_v46  ;;  %v1680_v47 = vadd.f32 %v2736_v39, %v2624_v40  ;;  %v989_v39 = vld [vmem:[#allocation2 + $0xd0] sm:$0xff] }
 0x2b7   : > { %v2626_v48 = vpop.f32.mrf.mxu1  ;;  %v2738_v50 = vpop.f32.mrf.mxu0 }
 0x2b8   : > { %v1752_v57 = vadd.f32 %v1680_v47, %v982_v42  ;;  %v2627_v58 = vadd.f32 %v2626_v48, %v2625_v43  ;;  %v2739_v61 = vadd.f32 %v2738_v50, %v2737_v44 }
 0x2b9   : > { %v2628_v52 = vpop.f32.mrf.mxu1  ;;  %v2740_v55 = vpop.f32.mrf.mxu0 }
 0x2ba   : > { %1784 = vst [vmem:[#allocation2 + $0x40] sm:$0xff] %v1752_v57  ;;  %v1683_v56 = vadd.f32 %v2739_v61, %v2627_v58  ;;  %v990_v61 = vld [vmem:[#allocation2 + $0x10] sm:$0xff] }
 0x2bb   : > { %v2629_v62 = vpop.f32.mrf.mxu1  ;;  %v2741_v63 = vpop.f32.mrf.mxu0 }
 0x2bc   : > { %v1753_v0 = vadd.f32 %v1683_v56, %v983_v51  ;;  %v2630_v1 = vadd.f32 %v2629_v62, %v2628_v52  ;;  %v2742_v53 = vadd.f32 %v2741_v63, %v2740_v55 }
 0x2bd   : > { %v2631_v2 = vpop.f32.mrf.mxu1  ;;  %v2743_v54 = vpop.f32.mrf.mxu0 }
 0x2be   : > { %1785 = vst [vmem:[#allocation2 + $0xc8] sm:$0xff] %v1753_v0  ;;  %v1688_v60 = vadd.f32 %v2742_v53, %v2630_v1  ;;  %v991_v53 = vld [vmem:[#allocation2 + $0x28] sm:$0xff] }
 0x2bf   : > { %v2632_v3 = vpop.f32.mrf.mxu1  ;;  %v2744_v4 = vpop.f32.mrf.mxu0 }
 0x2c0   : > { %v1754_v5 = vadd.f32 %v1688_v60, %v984_v59  ;;  %v2633_v6 = vadd.f32 %v2632_v3, %v2631_v2  ;;  %v2745_v7 = vadd.f32 %v2744_v4, %v2743_v54 }
 0x2c1   : > { %v2634_v9 = vpop.f32.mrf.mxu1  ;;  %v2746_v10 = vpop.f32.mrf.mxu0 }
 0x2c2   : > { %1786 = vst [vmem:[#allocation2 + $0xe0] sm:$0xff] %v1754_v5  ;;  %v1691_v11 = vadd.f32 %v2745_v7, %v2633_v6  ;;  %v992_v7 = vld [vmem:[#allocation2 + $0xa0] sm:$0xff] }
 0x2c3   : > { %v2635_v12 = vpop.f32.mrf.mxu1  ;;  %v2747_v13 = vpop.f32.mrf.mxu0 }
 0x2c4   : > { %v1755_v14 = vadd.f32 %v1691_v11, %v985_v8  ;;  %v2636_v15 = vadd.f32 %v2635_v12, %v2634_v9  ;;  %v2748_v16 = vadd.f32 %v2747_v13, %v2746_v10 }
 0x2c5   : > { %v2637_v18 = vpop.f32.mrf.mxu1  ;;  %v2749_v19 = vpop.f32.mrf.mxu0 }
 0x2c6   : > { %1787 = vst [vmem:[#allocation2 + $0x90] sm:$0xff] %v1755_v14  ;;  %v1696_v20 = vadd.f32 %v2748_v16, %v2636_v15  ;;  %v993_v16 = vld [vmem:[#allocation2 + $0xf8] sm:$0xff] }
 0x2c7   : > { %v2638_v21 = vpop.f32.mrf.mxu1  ;;  %v2750_v22 = vpop.f32.mrf.mxu0 }
 0x2c8   : > { %v1756_v23 = vadd.f32 %v1696_v20, %v986_v17  ;;  %v2639_v24 = vadd.f32 %v2638_v21, %v2637_v18  ;;  %v2751_v25 = vadd.f32 %v2750_v22, %v2749_v19 }
 0x2c9   : > { %v2640_v27 = vpop.f32.mrf.mxu1  ;;  %v2752_v28 = vpop.f32.mrf.mxu0 }
 0x2ca   : > { %1788 = vst [vmem:[#allocation2 + $0x70] sm:$0xff] %v1756_v23  ;;  %v1699_v29 = vadd.f32 %v2751_v25, %v2639_v24  ;;  %v994_v25 = vld [vmem:[#allocation2 + $0x20] sm:$0xff] }
 0x2cb   : > { %v2641_v30 = vpop.f32.mrf.mxu1  ;;  %v2753_v31 = vpop.f32.mrf.mxu0 }
 0x2cc   : > { %v1757_v32 = vadd.f32 %v1699_v29, %v987_v26  ;;  %v2642_v33 = vadd.f32 %v2641_v30, %v2640_v27  ;;  %v2754_v34 = vadd.f32 %v2753_v31, %v2752_v28 }
 0x2cd   : > { %v2643_v36 = vpop.f32.mrf.mxu1  ;;  %v2755_v37 = vpop.f32.mrf.mxu0 }
 0x2ce   : > { %1789 = vst [vmem:[#allocation2 + $0xc0] sm:$0xff] %v1757_v32  ;;  %v1704_v38 = vadd.f32 %v2754_v34, %v2642_v33  ;;  %v995_v34 = vld [vmem:[#allocation2 + $0x98] sm:$0xff] }
 0x2cf   : > { %v2644_v49 = vpop.f32.mrf.mxu1  ;;  %v2756_v41 = vpop.f32.mrf.mxu0 }
 0x2d0   : > { %v1758_v45 = vadd.f32 %v1704_v38, %v988_v35  ;;  %v2645_v46 = vadd.f32 %v2644_v49, %v2643_v36  ;;  %v2757_v40 = vadd.f32 %v2756_v41, %v2755_v37 }
 0x2d1   : > { %v2646_v42 = vpop.f32.mrf.mxu1  ;;  %v2758_v43 = vpop.f32.mrf.mxu0 }
 0x2d2   : > { %1790 = vst [vmem:[#allocation2 + $0xa8] sm:$0xff] %v1758_v45  ;;  %v1707_v44 = vadd.f32 %v2757_v40, %v2645_v46 }
 0x2d3   : > { %v2647_v47 = vpop.f32.mrf.mxu1  ;;  %v2759_v48 = vpop.f32.mrf.mxu0 }
 0x2d4   : > { %v1759_v50 = vadd.f32 %v1707_v44, %v989_v39  ;;  %v2648_v57 = vadd.f32 %v2647_v47, %v2646_v42  ;;  %v2760_v58 = vadd.f32 %v2759_v48, %v2758_v43 }
 0x2d5   : > { %v2649_v51 = vpop.f32.mrf.mxu1  ;;  %v2761_v52 = vpop.f32.mrf.mxu0 }
 0x2d6   : > { %1791 = vst [vmem:[#allocation2 + $0xd0] sm:$0xff] %v1759_v50  ;;  %v1712_v55 = vadd.f32 %v2760_v58, %v2648_v57 }
 0x2d7   : > { %v2650_v56 = vpop.f32.mrf.mxu1  ;;  %v2762_v62 = vpop.f32.mrf.mxu0 }
 0x2d8   : > { %v1760_v63 = vadd.f32 %v1712_v55, %v990_v61  ;;  %v2651_v0 = vadd.f32 %v2650_v56, %v2649_v51  ;;  %v2763_v1 = vadd.f32 %v2762_v62, %v2761_v52 }
 0x2d9   : > { %v2652_v59 = vpop.f32.mrf.mxu1  ;;  %v2764_v2 = vpop.f32.mrf.mxu0 }
 0x2da   : > { %1792 = vst [vmem:[#allocation2 + $0x10] sm:$0xff] %v1760_v63  ;;  %v1715_v54 = vadd.f32 %v2763_v1, %v2651_v0 }
 0x2db   : > { %v2653_v60 = vpop.f32.mrf.mxu1  ;;  %v2765_v3 = vpop.f32.mrf.mxu0 }
 0x2dc   : > { %v1761_v4 = vadd.f32 %v1715_v54, %v991_v53  ;;  %v2654_v5 = vadd.f32 %v2653_v60, %v2652_v59  ;;  %v2766_v6 = vadd.f32 %v2765_v3, %v2764_v2 }
 0x2dd   : > { %v2655_v8 = vpop.f32.mrf.mxu1  ;;  %v2767_v9 = vpop.f32.mrf.mxu0 }
 0x2de   : > { %1793 = vst [vmem:[#allocation2 + $0x28] sm:$0xff] %v1761_v4  ;;  %v1720_v10 = vadd.f32 %v2766_v6, %v2654_v5 }
 0x2df   : > { %v2656_v11 = vpop.f32.mrf.mxu1  ;;  %v2768_v12 = vpop.f32.mrf.mxu0 }
 0x2e0   : > { %v1762_v13 = vadd.f32 %v1720_v10, %v992_v7  ;;  %v2657_v14 = vadd.f32 %v2656_v11, %v2655_v8  ;;  %v2769_v15 = vadd.f32 %v2768_v12, %v2767_v9 }
 0x2e1   : > { %v2658_v17 = vpop.f32.mrf.mxu1  ;;  %v2770_v18 = vpop.f32.mrf.mxu0 }
 0x2e2   : > { %1794 = vst [vmem:[#allocation2 + $0xa0] sm:$0xff] %v1762_v13  ;;  %v1723_v19 = vadd.f32 %v2769_v15, %v2657_v14 }
 0x2e3   : > { %v2659_v20 = vpop.f32.mrf.mxu1  ;;  %v2771_v21 = vpop.f32.mrf.mxu0 }
 0x2e4   : > { %v1763_v22 = vadd.f32 %v1723_v19, %v993_v16  ;;  %v2660_v23 = vadd.f32 %v2659_v20, %v2658_v17  ;;  %v2772_v24 = vadd.f32 %v2771_v21, %v2770_v18 }
 0x2e5   : > { %v2661_v26 = vpop.f32.mrf.mxu1  ;;  %v2773_v27 = vpop.f32.mrf.mxu0 }
 0x2e6   : > { %1795 = vst [vmem:[#allocation2 + $0xf8] sm:$0xff] %v1763_v22  ;;  %v1728_v28 = vadd.f32 %v2772_v24, %v2660_v23 }
 0x2e7   : > { %v2662_v29 = vpop.f32.mrf.mxu1  ;;  %v2774_v30 = vpop.f32.mrf.mxu0 }
 0x2e8   : > { %v1764_v31 = vadd.f32 %v1728_v28, %v994_v25  ;;  %v2663_v32 = vadd.f32 %v2662_v29, %v2661_v26  ;;  %v2775_v33 = vadd.f32 %v2774_v30, %v2773_v27 }
 0x2ea   : > { %1796 = vst [vmem:[#allocation2 + $0x20] sm:$0xff] %v1764_v31  ;;  %v1731_v35 = vadd.f32 %v2775_v33, %v2663_v32  ;;  %1801 = sbr.rel (%p2348_p7) target bundleno = 777 (0x309), region = 56 }
 0x2ec   : > { %v1765_v36 = vadd.f32 %v1731_v35, %v995_v34 }
 0x2ee   : > { %1797 = vst [vmem:[#allocation2 + $0x98] sm:$0xff] %v1765_v36 }
 0x2ef   : > { %v1802_v37 = vld [vmem:[#allocation2 + $0xb0] sm:$0xff]  ;;  %v1803_v38 = vld [vmem:[#allocation2] sm:$0xff]  ;;  %v1804_v46 = vld [vmem:[#allocation2 + $0xd8] sm:$0xff] }
 0x2f0   : > { %v3793_v49 = vld [vmem:[#allocation8] ss:$0 sm:$0xff]  ;;  %v1805_v40 = vld [vmem:[#allocation2 + $0x18] sm:$0xff]  ;;  %v1806_v39 = vld [vmem:[#allocation2 + $0x50] sm:$0xff] }
 0x2f1   : > { %v1841_v41 = vadd.f32 %v3793_v49, %v1802_v37  ;;  %v1842_v45 = vadd.f32 %v3793_v49, %v1803_v38  ;;  %v1843_v42 = vadd.f32 %v3793_v49, %v1804_v46  ;;  %v1844_v43 = vadd.f32 %v3793_v49, %v1805_v40  ;;  %v1807_v44 = vld [vmem:[#allocation2 + $0x68] sm:$0xff]  ;;  %v1808_v48 = vld [vmem:[#allocation2 + $0x30] sm:$0xff]  ;;  %v1810_v52 = vld [vmem:[#allocation2 + $0x80] sm:$0xff] }
 0x2f2   : > { %v1845_v47 = vadd.f32 %v3793_v49, %v1806_v39  ;;  %v1809_v50 = vld [vmem:[#allocation2 + $0x48] sm:$0xff]  ;;  %v1846_v61 = vadd.f32 %v3793_v49, %v1807_v44  ;;  %v1847_v51 = vadd.f32 %v3793_v49, %v1808_v48  ;;  %v1813_v53 = vld [vmem:[#allocation2 + $0xb8] sm:$0xff]  ;;  %v1814_v59 = vld [vmem:[#allocation2 + $0x60] sm:$0xff]  ;;  %v1849_v3 = vadd.f32 %v3793_v49, %v1810_v52 }
 0x2f3   : > { %v1873_v57 = vmax.f32 %v1841_v41, 0.0  ;;  %v1874_v58 = vmax.f32 %v1842_v45, 0.0  ;;  %v1811_v55 = vld [vmem:[#allocation2 + $0x88] sm:$0xff]  ;;  %v1875_v62 = vmax.f32 %v1843_v42, 0.0  ;;  %v1876_v63 = vmax.f32 %v1844_v43, 0.0  ;;  %v1815_v4 = vld [vmem:[#allocation2 + $0xf0] sm:$0xff] }
 0x2f4   : > { %v1812_v56 = vld [vmem:[#allocation2 + $0xe8] sm:$0xff]  ;;  %v1877_v0 = vmax.f32 %v1845_v47, 0.0  ;;  %v1848_v1 = vadd.f32 %v3793_v49, %v1809_v50  ;;  %v1878_v54 = vmax.f32 %v1846_v61, 0.0  ;;  %v1879_v60 = vmax.f32 %v1847_v51, 0.0  ;;  %v1817_v10 = vld [vmem:[#allocation2 + $0x78] sm:$0xff]  ;;  %v1820_v21 = vld [vmem:[#allocation2 + $0x40] sm:$0xff] }
 0x2f5   : > { %v2424_v2 = vpack.c.bf16 %v1874_v58, %v1873_v57  ;;  %v2429_v5 = vpack.c.bf16 %v1876_v63, %v1875_v62  ;;  %v1850_v7 = vadd.f32 %v3793_v49, %v1811_v55  ;;  %v1851_v8 = vadd.f32 %v3793_v49, %v1812_v56  ;;  %v1816_v9 = vld [vmem:[#allocation2 + $0x8] sm:$0xff]  ;;  %v1818_v15 = vld [vmem:[#allocation2 + $0x38] sm:$0xff]  ;;  %v1822_v31 = vld [vmem:[#allocation2 + $0xe0] sm:$0xff] }
 0x2f6   : > { %v1880_v6 = vmax.f32 %v1848_v1, 0.0  ;;  %v2434_v11 = vpack.c.bf16 %v1878_v54, %v1877_v0  ;;  %v1881_v12 = vmax.f32 %v1849_v3, 0.0  ;;  %v1852_v13 = vadd.f32 %v3793_v49, %v1813_v53  ;;  %v1819_v16 = vld [vmem:[#allocation2 + $0x58] sm:$0xff]  ;;  %v1821_v26 = vld [vmem:[#allocation2 + $0xc8] sm:$0xff]  ;;  %v1823_v32 = vld [vmem:[#allocation2 + $0x90] sm:$0xff] }
 0x2f7   : > { %2425 = vst [vmem:[%s3541_s26] sm:$0xff] %v2424_v2   ;;  %v1853_v14 = vadd.f32 %v3793_v49, %v1814_v59  ;;  %2501 = vst [vmem:[%s3541_s26 + $0x8] sm:$0xff] %v2429_v5   ;;  %v1882_v18 = vmax.f32 %v1850_v7, 0.0  ;;  %v1883_v19 = vmax.f32 %v1851_v8, 0.0  ;;  %v1854_v20 = vadd.f32 %v3793_v49, %v1815_v4  ;;  %v1824_v37 = vld [vmem:[#allocation2 + $0x70] sm:$0xff]  ;;  %v1825_v38 = vld [vmem:[#allocation2 + $0xc0] sm:$0xff] }
 0x2f8   : > { %v2439_v17 = vpack.c.bf16 %v1880_v6, %v1879_v60  ;;  %2502 = vst [vmem:[%s3541_s26 + $0x10] sm:$0xff] %v2434_v11   ;;  %v1884_v22 = vmax.f32 %v1852_v13, 0.0  ;;  %v1855_v24 = vadd.f32 %v3793_v49, %v1816_v9  ;;  %v1856_v25 = vadd.f32 %v3793_v49, %v1817_v10  ;;  %v1826_v39 = vld [vmem:[#allocation2 + $0xa8] sm:$0xff]  ;;  %v1827_v42 = vld [vmem:[#allocation2 + $0xd0] sm:$0xff]  ;;  %v1830_v0 = vld [vmem:[#allocation2 + $0xa0] sm:$0xff] }
 0x2f9   : > { %v1885_v23 = vmax.f32 %v1853_v14, 0.0  ;;  %v2444_v27 = vpack.c.bf16 %v1882_v18, %v1881_v12  ;;  %v1886_v28 = vmax.f32 %v1854_v20, 0.0  ;;  %v1857_v29 = vadd.f32 %v3793_v49, %v1818_v15  ;;  %v1828_v50 = vld [vmem:[#allocation2 + $0x10] sm:$0xff]  ;;  %v1829_v52 = vld [vmem:[#allocation2 + $0x28] sm:$0xff]  ;;  %v1831_v1 = vld [vmem:[#allocation2 + $0xf8] sm:$0xff] }
 0x2fa   : > { %2503 = vst [vmem:[%s3541_s26 + $0x18] sm:$0xff] %v2439_v17   ;;  %v1858_v30 = vadd.f32 %v3793_v49, %v1819_v16  ;;  %v2449_v33 = vpack.c.bf16 %v1884_v22, %v1883_v19  ;;  %v1887_v34 = vmax.f32 %v1855_v24, 0.0  ;;  %v1888_v35 = vmax.f32 %v1856_v25, 0.0  ;;  %v1832_v60 = vld [vmem:[#allocation2 + $0x20] sm:$0xff]  ;;  %v1833_v3 = vld [vmem:[#allocation2 + $0x98] sm:$0xff] }
 0x2fb   : > { %v1859_v36 = vadd.f32 %v3793_v49, %v1820_v21  ;;  %2504 = vst [vmem:[%s3541_s26 + $0x20] sm:$0xff] %v2444_v27   ;;  %v2454_v41 = vpack.c.bf16 %v1886_v28, %v1885_v23  ;;  %v1889_v45 = vmax.f32 %v1857_v29, 0.0  ;;  %v1860_v40 = vadd.f32 %v3793_v49, %v1821_v26 }
 0x2fc   : > { %v1890_v46 = vmax.f32 %v1858_v30, 0.0  ;;  %2505 = vst [vmem:[%s3541_s26 + $0x28] sm:$0xff] %v2449_v33   ;;  %v2459_v43 = vpack.c.bf16 %v1888_v35, %v1887_v34  ;;  %v1861_v47 = vadd.f32 %v3793_v49, %v1822_v31  ;;  %v1862_v48 = vadd.f32 %v3793_v49, %v1823_v32 }
 0x2fd   : > { %v1891_v44 = vmax.f32 %v1859_v36, 0.0  ;;  %2506 = vst [vmem:[%s3541_s26 + $0x30] sm:$0xff] %v2454_v41   ;;  %v1892_v58 = vmax.f32 %v1860_v40, 0.0  ;;  %v1863_v61 = vadd.f32 %v3793_v49, %v1824_v37  ;;  %v1864_v51 = vadd.f32 %v3793_v49, %v1825_v38 }
 0x2fe   : > { %v2464_v57 = vpack.c.bf16 %v1890_v46, %v1889_v45  ;;  %2507 = vst [vmem:[%s3541_s26 + $0x38] sm:$0xff] %v2459_v43   ;;  %v1893_v55 = vmax.f32 %v1861_v47, 0.0  ;;  %v1894_v56 = vmax.f32 %v1862_v48, 0.0  ;;  %v1865_v62 = vadd.f32 %v3793_v49, %v1826_v39 }
 0x2ff   : > { %v1866_v63 = vadd.f32 %v3793_v49, %v1827_v42  ;;  %v2469_v53 = vpack.c.bf16 %v1892_v58, %v1891_v44  ;;  %v1895_v59 = vmax.f32 %v1863_v61, 0.0  ;;  %v1896_v2 = vmax.f32 %v1864_v51, 0.0 }
 0x300   : > { %2508 = vst [vmem:[%s3541_s26 + $0x40] sm:$0xff] %v2464_v57   ;;  %v1867_v54 = vadd.f32 %v3793_v49, %v1828_v50  ;;  %v2474_v4 = vpack.c.bf16 %v1894_v56, %v1893_v55  ;;  %v1897_v5 = vmax.f32 %v1865_v62, 0.0  ;;  %v1868_v7 = vadd.f32 %v3793_v49, %v1829_v52 }
 0x301   : > { %v1898_v6 = vmax.f32 %v1866_v63, 0.0  ;;  %2509 = vst [vmem:[%s3541_s26 + $0x48] sm:$0xff] %v2469_v53   ;;  %v2479_v8 = vpack.c.bf16 %v1896_v2, %v1895_v59  ;;  %v1869_v10 = vadd.f32 %v3793_v49, %v1830_v0  ;;  %v1870_v11 = vadd.f32 %v3793_v49, %v1831_v1 }
 0x302   : > { %v1899_v9 = vmax.f32 %v1867_v54, 0.0  ;;  %2510 = vst [vmem:[%s3541_s26 + $0x50] sm:$0xff] %v2474_v4   ;;  %v1900_v13 = vmax.f32 %v1868_v7, 0.0  ;;  %v1871_v14 = vadd.f32 %v3793_v49, %v1832_v60  ;;  %v1872_v15 = vadd.f32 %v3793_v49, %v1833_v3 }
 0x303   : > { %v2484_v12 = vpack.c.bf16 %v1898_v6, %v1897_v5  ;;  %2511 = vst [vmem:[%s3541_s26 + $0x58] sm:$0xff] %v2479_v8   ;;  %v1901_v16 = vmax.f32 %v1869_v10, 0.0  ;;  %v1902_v17 = vmax.f32 %v1870_v11, 0.0 }
 0x304   : > { %v2489_v18 = vpack.c.bf16 %v1900_v13, %v1899_v9  ;;  %v1903_v19 = vmax.f32 %v1871_v14, 0.0  ;;  %v1904_v20 = vmax.f32 %v1872_v15, 0.0 }
 0x305   : > { %2512 = vst [vmem:[%s3541_s26 + $0x60] sm:$0xff] %v2484_v12   ;;  %v2494_v21 = vpack.c.bf16 %v1902_v17, %v1901_v16 }
 0x306   : > { %2513 = vst [vmem:[%s3541_s26 + $0x68] sm:$0xff] %v2489_v18   ;;  %v2499_v22 = vpack.c.bf16 %v1904_v20, %v1903_v19 }
 0x307   : > { %2514 = vst [vmem:[%s3541_s26 + $0x70] sm:$0xff] %v2494_v21  }
 0x308   : > { %2515 = vst [vmem:[%s3541_s26 + $0x78] sm:$0xff] %v2499_v22  }
 0x309 PF: > { %s3992_s21 = sld [smem:[#allocation14_spill]]  ;;  %s2079_s15 = sshll.u32 %s3541_s26, 4  ;;  %s3850_s15 = int_to_ptr.vmem [resolvable:$true] %s2079_s15 }
 0x30a   : > { %s3993_s29 = sld [smem:[#allocation17_spill]]  ;;  %s3854_s25 = scalar_lea.sflag [#allocation5], %s273_s1 }
 0x30b   : > { %s3994_s12 = sld [smem:[#allocation33_spill]]  ;;  %s3199_s7 = scalar_lea.vmem %s3850_s15, 2048 }
 0x30c   : > { %p3200_p5 = scmp.ne.s32.totalorder %s3850_s15, %s3199_s7  ;;  %s3334_s11 = smov [#allocation9]  }
 0x30d   : > { %s3203_s30 = sshll.u32 %s3334_s11, 4  ;;  %s3204_s30 = int_to_ptr.vmem [resolvable:$false] %s3203_s30 }
 0x30e   : > { %s3205_s5 = scalar_lea.vmem %s3204_s30, 4096  ;;  %p3206_p9 = scmp.lt.s32.totalorder %s3850_s15, %s3204_s30 }
 0x30f   : > { %s2420_s27 = sshll.u32 %s3992_s21, 11  ;;  %p3207_p11 = scmp.lt.s32.totalorder %s3205_s5, %s3199_s7 }
 0x310   : > { %p3995_p1 = scmp.ne.s32.totalorder %s3993_s29, 0 }
 0x311   : > { %s3847_s2 = scalar_lea.hbm %s3994_s12, %s2420_s27  ;;  %p3208_p12 = por %p3207_p11, %p3206_p9 }
 0x312   : > { %p3201_p4 = pnand %p3200_p5, %p3995_p1 }
 0x314   : > { %p3202_p2 = pneg %p3201_p4 }
 0x316   : > { %p3209_p10 = pnand %p3208_p12, %p3202_p2 }
 0x318   : > { %3212 = shalt.err (!%p3209_p10)
}
 0x319   : > { %s3213_s1 = scalar_lea.hbm %s3847_s2, 2048  ;;  %s3217_s13 = scalar_lea.hbm %s3994_s12, 8192 }
 0x31a   : > { %p3214_p3 = scmp.ne.s32.totalorder %s3847_s2, %s3213_s1  ;;  %p3218_p0 = scmp.lt.s32.totalorder %s3847_s2, %s3994_s12 }
 0x31b   : > { %p3219_p6 = scmp.lt.s32.totalorder %s3217_s13, %s3213_s1 }
 0x31c   : > { %p3215_p8 = pnand %p3214_p3, %p3995_p1 }
 0x31d   : > { %p3220_p7 = por %p3219_p6, %p3218_p0 }
 0x31e   : > { %p3216_p13 = pneg %p3215_p8 }
 0x320   : > { %p3221_p5 = pnand %p3220_p7, %p3216_p13 }
 0x322   : > { %3224 = shalt.err (!%p3221_p5)
}
 0x323   : > { %s3335_s6 = smov 64   ;;  %s3336_s14 = smov 4  }
 0x324   : > { %2866 = dma.vmem_to_hbm [thread:$0]  (%p3995_p1), %s3850_s15, 2048, %s3847_s2, %s3854_s25, %s3335_s6, %s3335_s6, %s3336_s14  }
 0x325 PF: > { %s3996_s26 = sld [smem:[#allocation16_spill]] }
 0x326   : > { %s3997_s21 = sld [smem:[#allocation13_spill]] }
 0x327   : > { %s3998_s27 = sld [smem:[#allocation18_spill]] }
 0x32b   : > { %p2888_p4 = scmp.ge.s32.totalorder %s3996_s26, 2 }
 0x32c   : > { %s2094_s8 = sand.u32 1, %s3997_s21  }
 0x32d   : > { %p3999_p2 = scmp.ne.s32.totalorder %s3998_s27, 0  ;;  %s2095_s3 = scalar_lea.sflag [#allocation5], %s2094_s8 }
 0x32f   : > { %p2880_p9 = pnand %p2888_p4, %p3999_p2 }
 0x331   : > { %p2881_p11 = pneg %p2880_p9 }
 0x333   : > { %3278 = dma.done.wait (%p2881_p11), %s2095_s3, 2048  }
 0x334   : > { %3280 = vsyncadd (%p2881_p11), %s2095_s3, 4294965248  ;;  %s21_s25 = sadd.s32 1, %s3996_s26   ;;  %s4000_s21 = sld [smem:[#allocation15_spill]] }
 0x335   : > { %p18_p12 = scmp.ge.s32.totalorder %s21_s25, 10   ;;  %s4001_s29 = sld [smem:[#allocation19_spill]] }
 0x336   : > { %s4002_s15 = smov %s3287_s16  ;;  %s4003_s16 = smov %s3291_s17 }
 0x337   : > { %s4004_s17 = smov %s3508_s23  ;;  %s4005_s18 = smov %s3299_s19 }
 0x338   : > { %s4006_s19 = smov %s3303_s20  ;;  %s4007_s20 = smov %s3513_s22 }
 0x339   : > { %s4008_s22 = smov %s3319_s24  ;;  %s4010_s24 = smov %s4016_s28 }
 0x33a   :  { %20 = sbr.rel (!%p18_p12) target bundleno = 15 (0xf), region = 100 }
 0x33b   : > { %s4009_s23 = smov %s4001_s29 }
 0x33f   :  { %2100 = vsyncpa [#allocation4], 1 }
 0x340   :  { %2102 = vsyncpa [#allocation4 + $0x1], 1 }
 0x341   :  { %2103 = vsyncpa [#allocation7], 1 }
 0x342   :  { %2104 = vsyncpa [#allocation5], 1 }
 0x343   :  { %2106 = vsyncpa [#allocation5 + $0x1], 1 }

</bundles_post_ra>
